<compile_context>
chip_gen: v7x
topology: tpu7x:2x2x1
jax: 0.10.0
libtpu: 0.0.40
codegen_flags: <defaults>
</compile_context>

<pallas_src>
import functools

import jax
import jax.numpy as jnp
from jax.experimental import pallas as pl
from jax.experimental.pallas import tpu as pltpu

_NEG = -1e30  # finite "minus infinity" so masked entries never win the max


def _round_up(x, m):
    return (x + m - 1) // m * m


# ----------------------------- fused Pallas kernel ---------------------------

def fused_forward_kernel(patches_ref,                 # [Bp*NB*Lpad, Kpad]
                         wconv_ref,                   # [Kpad, NB*Cout]
                         mask_ref,                    # [NB*Lpad, NB*Cout]
                         bconv_ref,                   # [1, NB*Cout]
                         wseq_ref, bseq_ref,          # [NB*Cout, H], [1, H]
                         xnet_ref, wnet_ref, bnet_ref,     # [Bp, Dn], [Dn, H], [1, H]
                         xdesc_ref, wdesc_ref, bdesc_ref,  # [Bp, Dd], [Dd, H], [1, H]
                         wcs_ref, wcn_ref, wcd_ref,   # cat2emb blocks [H, text_dim]
                         bcat_ref,                    # [1, text_dim]
                         textsT_ref,                  # [text_dim, t_tile]  (per-tile)
                         out_ref,                     # [Bp, t_tile]        (per-tile)
                         emb_ref,                     # VMEM scratch [Bp, text_dim]
                         *, batch, neg_slope):
    # ---- T-invariant encoder: runs exactly once, cached in VMEM scratch -----
    @pl.when(pl.program_id(0) == 0)
    def _encode_once():
        # All Conv1d banks + global MaxPool1d as one MXU matmul + masked max.
        conv = jnp.dot(patches_ref[...], wconv_ref[...],
                       preferred_element_type=jnp.float32)     # [Bp*NB*Lpad, NBC]
        nbc = conv.shape[-1]
        conv = conv.reshape(batch, -1, nbc) + mask_ref[...]    # [Bp, NB*Lpad, NBC]
        seq_cat = jnp.max(conv, axis=1) + bconv_ref[...]       # [Bp, NBC]

        # Linear + LeakyReLU feature encoders (bias added once, post-matmul).
        def lin_lrelu(x, w_ref, b_ref):
            y = jnp.dot(x, w_ref[...],
                        preferred_element_type=jnp.float32) + b_ref[...]
            return jnp.where(y > 0, y, neg_slope * y)

        f_seq = lin_lrelu(seq_cat, wseq_ref, bseq_ref)          # [Bp, H]
        f_net = lin_lrelu(xnet_ref[...], wnet_ref, bnet_ref)    # [Bp, H]
        f_desc = lin_lrelu(xdesc_ref[...], wdesc_ref, bdesc_ref)  # [Bp, H]

        # cat2emb as per-feature block dots summed (== concat @ Wc) + bias.
        emb_ref[...] = (
            jnp.dot(f_seq, wcs_ref[...], preferred_element_type=jnp.float32)
            + jnp.dot(f_net, wcn_ref[...], preferred_element_type=jnp.float32)
            + jnp.dot(f_desc, wcd_ref[...], preferred_element_type=jnp.float32)
            + bcat_ref[...])                                    # [Bp, text_dim]

    # ---- per-T-tile head: one tiny matmul + sigmoid + lane-dense store ------
    logits = jnp.dot(emb_ref[...], textsT_ref[...],
                     preferred_element_type=jnp.float32)        # [Bp, t_tile]
    out_ref[...] = jax.nn.sigmoid(logits)


# ------------------------------ wrapper glue ---------------------------------

def _im2col_stacked(x, kernels, lpad, kpad):
    """x: [Bp, Cin, L] -> stacked patches [Bp*NB*Lpad, Kpad] (channel-major taps)."""
    B, Cin, L = x.shape
    banks = []
    for k in kernels:
        lout = L - k + 1
        idx = jnp.arange(lout)[:, None] + jnp.arange(k)[None, :]      # [Lout, k]
        p = x[:, :, idx]                                              # [B, Cin, Lout, k]
        p = jnp.transpose(p, (0, 2, 1, 3)).reshape(B, lout, Cin * k)
        p = jnp.pad(p, ((0, 0), (0, lpad - lout), (0, kpad - Cin * k)))
        banks.append(p)
    patches = jnp.stack(banks, axis=1)                                # [B, NB, Lpad, Kpad]
    return patches.reshape(B * len(kernels) * lpad, kpad)


def _prep_conv_bank(params, cfg, L):
    """Stack per-bank conv weights/biases and build the additive valid mask."""
    kernels = cfg["kernels"]
    Cin = cfg["seq_input_nc"]
    Cout = cfg["seq_in_nc"]
    NB = len(kernels)
    louts = [L - k + 1 for k in kernels]
    lpad = _round_up(max(louts), 8)
    kpad = _round_up(Cin * max(kernels), 128)
    nbc = NB * Cout

    w_all = jnp.zeros((kpad, nbc), jnp.float32)
    b_all = []
    valid = []
    cols = jnp.arange(nbc)
    for nb, k in enumerate(kernels):
        w, b = params["conv"][nb]                                 # [Cin*k, Cout], [1, Cout]
        w_all = w_all.at[: Cin * k, nb * Cout:(nb + 1) * Cout].set(w)
        b_all.append(b)
        row_ok = (jnp.arange(lpad) < louts[nb])[:, None]          # valid positions
        col_ok = ((cols >= nb * Cout) & (cols < (nb + 1) * Cout))[None, :]  # own bank cols
        valid.append(row_ok & col_ok)
    b_all = jnp.concatenate(b_all, axis=1)                        # [1, NBC]
    mask = jnp.where(jnp.concatenate(valid, axis=0), 0.0, _NEG)   # [NB*Lpad, NBC]
    return w_all, b_all, mask, lpad, kpad


def base_model_forward(params, cfg, input_seq, input_description, input_vector,
                       texts, *, t_tile=256):
    """BaseModel.forward: sigmoid(data_encoder(...) @ texts.T), fully fused."""
    # TODO(synk): only the {seqs, network, description} feature set is fused
    # here (the 'expression' branch is never exercised by BaseModel.forward).
    assert set(cfg["features"]) == {"seqs", "network", "description"}

    B, _, L = input_seq.shape
    H = cfg["hidden_dim"]
    NB = len(cfg["kernels"])
    Cout = cfg["seq_in_nc"]
    NBC = NB * Cout
    Dn = cfg["network_dim"]
    Dd = cfg["description_dim"]
    Td = cfg["text_dim"]
    T = texts.shape[0]

    # Pad batch to a full 8-sublane tile (unmasked stores, full MXU sublanes).
    Bp = _round_up(B, 8)
    seq_p = jnp.pad(input_seq, ((0, Bp - B), (0, 0), (0, 0)))
    net_p = jnp.pad(input_vector, ((0, Bp - B), (0, 0)))
    desc_p = jnp.pad(input_description, ((0, Bp - B), (0, 0)))

    wconv, bconv, mask, lpad, kpad = _prep_conv_bank(params, cfg, L)
    patches = _im2col_stacked(seq_p, cfg["kernels"], lpad, kpad)

    # texts^T streamed in lane-dense [Td, t_tile] tiles (the only T-scaled operand).
    tpad = _round_up(T, t_tile)
    texts_t = jnp.pad(texts, ((0, tpad - T), (0, 0))).T            # [Td, Tpad]

    # cat2emb weight split per feature block (concat order == cfg["features"]).
    wc, bc = params["cat2emb"]                                     # [3H, Td], [1, Td]
    blocks = {f: wc[i * H:(i + 1) * H] for i, f in enumerate(cfg["features"])}

    wseq, bseq = params["fc_seq"]
    wnet, bnet = params["fc_network"]
    wdesc, bdesc = params["fc_description"]

    M = Bp * NB * lpad

    # Constant index_map -> DMA'd once, stays VMEM-resident across T tiles.
    def const(shape):
        return pl.BlockSpec(shape, lambda t: tuple(0 for _ in shape))

    out_pad = pl.pallas_call(
        functools.partial(fused_forward_kernel, batch=Bp, neg_slope=0.01),
        out_shape=jax.ShapeDtypeStruct((Bp, tpad), jnp.float32),
        grid_spec=pltpu.PrefetchScalarGridSpec(
            num_scalar_prefetch=0,
            grid=(tpad // t_tile,),
            in_specs=[
                const((M, kpad)),                                  # patches
                const((kpad, NBC)),                                # stacked conv W
                const((NB * lpad, NBC)),                           # additive mask
                const((1, NBC)),                                   # stacked conv bias
                const((NBC, H)), const((1, H)),                    # fc_seq
                const((Bp, Dn)), const((Dn, H)), const((1, H)),    # network branch
                const((Bp, Dd)), const((Dd, H)), const((1, H)),    # description branch
                const((H, Td)), const((H, Td)), const((H, Td)),    # cat2emb blocks
                const((1, Td)),                                    # cat2emb bias
                pl.BlockSpec((Td, t_tile), lambda t: (0, t)),      # texts^T tile
            ],
            out_specs=pl.BlockSpec((Bp, t_tile), lambda t: (0, t)),
            scratch_shapes=[pltpu.VMEM((Bp, Td), jnp.float32)],    # cached embedding
        ),
        compiler_params=pltpu.CompilerParams(
            # "arbitrary": the t==0 encoder cache relies on sequential grid order.
            dimension_semantics=("arbitrary",),
            vmem_limit_bytes=32 * 1024 * 1024),
    )(patches, wconv, mask, bconv,
      wseq, bseq,
      net_p, wnet, bnet,
      desc_p, wdesc, bdesc,
      blocks["seqs"], blocks["network"], blocks["description"], bc,
      texts_t)

    return out_pad[:B, :T]


# ------------------------------ params / reference ---------------------------

def _xavier(key, fan_in, fan_out, shape, gain=0.02):
    std = gain * jnp.sqrt(2.0 / (fan_in + fan_out))
    return std * jax.random.normal(key, shape, dtype=jnp.float32)


def init_params(key, cfg):
    params = {}
    kit = iter(jax.random.split(key, 16))
    Cin = cfg["seq_input_nc"]
    Cout = cfg["seq_in_nc"]
    H = cfg["hidden_dim"]

    # Conv1d banks stored as [Cin*k, Cout] (== torch weight [Cout,Cin,k].reshape(Cout,-1).T)
    params["conv"] = []
    for k in cfg["kernels"]:
        w = _xavier(next(kit), Cin * k, Cout * k, (Cin * k, Cout))
        params["conv"].append((w, jnp.zeros((1, Cout), jnp.float32)))

    seq_cat_dim = len(cfg["kernels"]) * Cout
    params["fc_seq"] = (_xavier(next(kit), seq_cat_dim, H, (seq_cat_dim, H)),
                        jnp.zeros((1, H), jnp.float32))
    params["fc_network"] = (_xavier(next(kit), cfg["network_dim"], H,
                                    (cfg["network_dim"], H)),
                            jnp.zeros((1, H), jnp.float32))
    params["fc_description"] = (_xavier(next(kit), cfg["description_dim"], H,
                                        (cfg["description_dim"], H)),
                                jnp.zeros((1, H), jnp.float32))
    cat_dim = len(cfg["features"]) * H
    params["cat2emb"] = (_xavier(next(kit), cat_dim, cfg["text_dim"],
                                 (cat_dim, cfg["text_dim"])),
                         jnp.zeros((1, cfg["text_dim"]), jnp.float32))
    return params


def reference_forward(params, cfg, input_seq, input_description, input_vector, texts):
    """Pure-JAX (unfused) reference matching the PyTorch forward semantics."""
    B, Cin, L = input_seq.shape
    x_list = []
    for i, k in enumerate(cfg["kernels"]):
        w, b = params["conv"][i]
        lout = L - k + 1
        idx = jnp.arange(lout)[:, None] + jnp.arange(k)[None, :]
        p = input_seq[:, :, idx]
        p = jnp.transpose(p, (0, 2, 1, 3)).reshape(B, lout, Cin * k)
        conv = jnp.einsum("blp,pc->blc", p, w) + b
        x_list.append(jnp.max(conv, axis=1))
    seq_cat = jnp.concatenate(x_list, axis=1)

    def lin_lrelu(x, w, b):
        y = x @ w + b
        return jnp.where(y > 0, y, 0.01 * y)

    feats = {
        "seqs": lin_lrelu(seq_cat, *params["fc_seq"]),
        "network": lin_lrelu(input_vector, *params["fc_network"]),
        "description": lin_lrelu(input_description, *params["fc_description"]),
    }
    x_enc = jnp.concatenate([feats[f] for f in cfg["features"]], axis=1)
    wc, bc = params["cat2emb"]
    return jax.nn.sigmoid((x_enc @ wc + bc) @ texts.T)


# --------------------------------- main ---------------------------------------

if __name__ == "__main__":
    # small, forward-consistent config (kernels = range(8, seq_max_kernels, 8));
    # 'expression' excluded: BaseModel.forward never passes x_expr.
    cfg = dict(
        features=["seqs", "network", "description"],
        hidden_dim=32,
        seq_input_nc=4,
        seq_in_nc=16,
        seq_max_kernels=25,          # -> kernels [8, 16, 24]
        max_length=64,
        network_dim=16,
        description_dim=24,
        text_dim=16,                 # term_enc_dim
    )
    cfg["kernels"] = list(range(8, cfg["seq_max_kernels"], 8))

    key = jax.random.PRNGKey(0)
    kp, k1, k2, k3, k4 = jax.random.split(key, 5)
    params = init_params(kp, cfg)

    B, T = 2, 300   # T > t_tile so the cached-encoder / multi-tile path is exercised
    input_seq = jax.random.normal(
        k1, (B, cfg["seq_input_nc"], cfg["max_length"]), dtype=jnp.float32)
    input_description = jax.random.normal(
        k2, (B, cfg["description_dim"]), dtype=jnp.float32)
    input_vector = jax.random.normal(
        k3, (B, cfg["network_dim"]), dtype=jnp.float32)
    texts = jax.random.normal(k4, (T, cfg["text_dim"]), dtype=jnp.float32)

    fwd = jax.jit(lambda p, s, d, v, t: base_model_forward(p, cfg, s, d, v, t))
    out = jax.block_until_ready(
        fwd(params, input_seq, input_description, input_vector, texts))

    ref = jax.block_until_ready(
        reference_forward(params, cfg, input_seq, input_description,
                          input_vector, texts))

    assert out.shape == (B, T)
    assert bool(jnp.all(jnp.isfinite(out)))
    assert bool(jnp.all((out >= 0.0) & (out <= 1.0)))
    assert bool(jnp.allclose(out, ref, atol=1e-4, rtol=1e-4))
    print("KERNEL_OK")
</pallas_src>

<mosaic_0001>
module attributes {stable_mosaic.version = 11 : i64} {
  func.func @fused_forward_kernel(%arg0: i32, %arg1: memref<1536x128xf32, #tpu.memory_space<vmem>>, %arg2: memref<128x48xf32, #tpu.memory_space<vmem>>, %arg3: memref<192x48xf32, #tpu.memory_space<vmem>>, %arg4: memref<1x48xf32, #tpu.memory_space<vmem>>, %arg5: memref<48x32xf32, #tpu.memory_space<vmem>>, %arg6: memref<1x32xf32, #tpu.memory_space<vmem>>, %arg7: memref<8x16xf32, #tpu.memory_space<vmem>>, %arg8: memref<16x32xf32, #tpu.memory_space<vmem>>, %arg9: memref<1x32xf32, #tpu.memory_space<vmem>>, %arg10: memref<8x24xf32, #tpu.memory_space<vmem>>, %arg11: memref<24x32xf32, #tpu.memory_space<vmem>>, %arg12: memref<1x32xf32, #tpu.memory_space<vmem>>, %arg13: memref<32x16xf32, #tpu.memory_space<vmem>>, %arg14: memref<32x16xf32, #tpu.memory_space<vmem>>, %arg15: memref<32x16xf32, #tpu.memory_space<vmem>>, %arg16: memref<1x16xf32, #tpu.memory_space<vmem>>, %arg17: memref<16x256xf32, #tpu.memory_space<vmem>>, %arg18: memref<8x256xf32, #tpu.memory_space<vmem>>, %arg19: memref<8x16xf32, #tpu.memory_space<vmem>>) attributes {dimension_semantics = [#tpu.dimension_semantics<arbitrary>], iteration_bounds = array<i64: 2>, scalar_prefetch = 0 : i64, scratch_operands = 1 : i64, tpu.core_type = #tpu.core_type<tc>, window_params = [{pipeline_mode = #tpu.pipeline_mode<synchronous>, transform_indices = @transform_0, window_bounds = array<i64: 1536, 128>}, {pipeline_mode = #tpu.pipeline_mode<synchronous>, transform_indices = @transform_1, window_bounds = array<i64: 128, 48>}, {pipeline_mode = #tpu.pipeline_mode<synchronous>, transform_indices = @transform_2, window_bounds = array<i64: 192, 48>}, {pipeline_mode = #tpu.pipeline_mode<synchronous>, transform_indices = @transform_3, window_bounds = array<i64: 1, 48>}, {pipeline_mode = #tpu.pipeline_mode<synchronous>, transform_indices = @transform_4, window_bounds = array<i64: 48, 32>}, {pipeline_mode = #tpu.pipeline_mode<synchronous>, transform_indices = @transform_5, window_bounds = array<i64: 1, 32>}, {pipeline_mode = #tpu.pipeline_mode<synchronous>, transform_indices = @transform_6, window_bounds = array<i64: 8, 16>}, {pipeline_mode = #tpu.pipeline_mode<synchronous>, transform_indices = @transform_7, window_bounds = array<i64: 16, 32>}, {pipeline_mode = #tpu.pipeline_mode<synchronous>, transform_indices = @transform_8, window_bounds = array<i64: 1, 32>}, {pipeline_mode = #tpu.pipeline_mode<synchronous>, transform_indices = @transform_9, window_bounds = array<i64: 8, 24>}, {pipeline_mode = #tpu.pipeline_mode<synchronous>, transform_indices = @transform_10, window_bounds = array<i64: 24, 32>}, {pipeline_mode = #tpu.pipeline_mode<synchronous>, transform_indices = @transform_11, window_bounds = array<i64: 1, 32>}, {pipeline_mode = #tpu.pipeline_mode<synchronous>, transform_indices = @transform_12, window_bounds = array<i64: 32, 16>}, {pipeline_mode = #tpu.pipeline_mode<synchronous>, transform_indices = @transform_13, window_bounds = array<i64: 32, 16>}, {pipeline_mode = #tpu.pipeline_mode<synchronous>, transform_indices = @transform_14, window_bounds = array<i64: 32, 16>}, {pipeline_mode = #tpu.pipeline_mode<synchronous>, transform_indices = @transform_15, window_bounds = array<i64: 1, 16>}, {transform_indices = @transform_16, window_bounds = array<i64: 16, 256>}, {transform_indices = @transform_17, window_bounds = array<i64: 8, 256>}]} {
    %c0_i32 = arith.constant 0 : i32
    %0 = arith.cmpi eq, %arg0, %c0_i32 : i32
    %1 = arith.extui %0 : i1 to i32
    %c0_i32_0 = arith.constant 0 : i32
    %2 = arith.cmpi ne, %1, %c0_i32_0 : i32
    scf.if %2 {
      %c0_7 = arith.constant 0 : index
      %c0_8 = arith.constant 0 : index
      %12 = vector.load %arg1[%c0_7, %c0_8] : memref<1536x128xf32, #tpu.memory_space<vmem>>, vector<1536x128xf32>
      %c0_9 = arith.constant 0 : index
      %c0_10 = arith.constant 0 : index
      %13 = vector.load %arg2[%c0_9, %c0_10] : memref<128x48xf32, #tpu.memory_space<vmem>>, vector<128x48xf32>
      %cst_11 = arith.constant dense<0.000000e+00> : vector<1536x48xf32>
      %14 = tpu.matmul %12, %13, %cst_11 {dimension_numbers = #tpu.dot_dimension_numbers<[1], [0], [0], [1], [0, 0, 1, 1], [], []>} : vector<1536x128xf32>, vector<128x48xf32>, vector<1536x48xf32> -> vector<1536x48xf32>
      %15 = vector.shape_cast %14 : vector<1536x48xf32> to vector<8x192x48xf32>
      %c0_12 = arith.constant 0 : index
      %c0_13 = arith.constant 0 : index
      %16 = vector.load %arg3[%c0_12, %c0_13] : memref<192x48xf32, #tpu.memory_space<vmem>>, vector<192x48xf32>
      %17 = vector.shape_cast %16 : vector<192x48xf32> to vector<192x48xf32>
      %18 = vector.shape_cast %17 : vector<192x48xf32> to vector<1x192x48xf32>
      %19 = vector.broadcast %18 : vector<1x192x48xf32> to vector<8x192x48xf32>
      %20 = arith.addf %15, %19 : vector<8x192x48xf32>
      %cst_14 = arith.constant dense<0xFF800000> : vector<8x48xf32>
      %21 = vector.multi_reduction <maximumf>, %20, %cst_14 [1] : vector<8x192x48xf32> to vector<8x48xf32>
      %c0_15 = arith.constant 0 : index
      %c0_16 = arith.constant 0 : index
      %22 = vector.load %arg4[%c0_15, %c0_16] : memref<1x48xf32, #tpu.memory_space<vmem>>, vector<1x48xf32>
      %23 = vector.broadcast %22 : vector<1x48xf32> to vector<8x48xf32>
      %24 = arith.addf %21, %23 : vector<8x48xf32>
      %c0_17 = arith.constant 0 : index
      %c0_18 = arith.constant 0 : index
      %25 = vector.load %arg5[%c0_17, %c0_18] : memref<48x32xf32, #tpu.memory_space<vmem>>, vector<48x32xf32>
      %cst_19 = arith.constant dense<0.000000e+00> : vector<8x32xf32>
      %26 = tpu.matmul %24, %25, %cst_19 {dimension_numbers = #tpu.dot_dimension_numbers<[1], [0], [0], [1], [0, 0, 1, 1], [], []>} : vector<8x48xf32>, vector<48x32xf32>, vector<8x32xf32> -> vector<8x32xf32>
      %c0_20 = arith.constant 0 : index
      %c0_21 = arith.constant 0 : index
      %27 = vector.load %arg6[%c0_20, %c0_21] : memref<1x32xf32, #tpu.memory_space<vmem>>, vector<1x32xf32>
      %28 = vector.broadcast %27 : vector<1x32xf32> to vector<8x32xf32>
      %29 = arith.addf %26, %28 : vector<8x32xf32>
      %cst_22 = arith.constant 0.000000e+00 : f32
      %30 = vector.broadcast %cst_22 : f32 to vector<8x32xf32>
      %31 = arith.cmpf ogt, %29, %30 : vector<8x32xf32>
      %cst_23 = arith.constant 0.00999999977 : f32
      %32 = vector.broadcast %cst_23 : f32 to vector<8x32xf32>
      %33 = arith.mulf %32, %29 : vector<8x32xf32>
      %34 = arith.select %31, %29, %33 : vector<8x32xi1>, vector<8x32xf32>
      %c0_24 = arith.constant 0 : index
      %c0_25 = arith.constant 0 : index
      %35 = vector.load %arg7[%c0_24, %c0_25] : memref<8x16xf32, #tpu.memory_space<vmem>>, vector<8x16xf32>
      %c0_26 = arith.constant 0 : index
      %c0_27 = arith.constant 0 : index
      %36 = vector.load %arg8[%c0_26, %c0_27] : memref<16x32xf32, #tpu.memory_space<vmem>>, vector<16x32xf32>
      %cst_28 = arith.constant dense<0.000000e+00> : vector<8x32xf32>
      %37 = tpu.matmul %35, %36, %cst_28 {dimension_numbers = #tpu.dot_dimension_numbers<[1], [0], [0], [1], [0, 0, 1, 1], [], []>} : vector<8x16xf32>, vector<16x32xf32>, vector<8x32xf32> -> vector<8x32xf32>
      %c0_29 = arith.constant 0 : index
      %c0_30 = arith.constant 0 : index
      %38 = vector.load %arg9[%c0_29, %c0_30] : memref<1x32xf32, #tpu.memory_space<vmem>>, vector<1x32xf32>
      %39 = vector.broadcast %38 : vector<1x32xf32> to vector<8x32xf32>
      %40 = arith.addf %37, %39 : vector<8x32xf32>
      %cst_31 = arith.constant 0.000000e+00 : f32
      %41 = vector.broadcast %cst_31 : f32 to vector<8x32xf32>
      %42 = arith.cmpf ogt, %40, %41 : vector<8x32xf32>
      %cst_32 = arith.constant 0.00999999977 : f32
      %43 = vector.broadcast %cst_32 : f32 to vector<8x32xf32>
      %44 = arith.mulf %43, %40 : vector<8x32xf32>
      %45 = arith.select %42, %40, %44 : vector<8x32xi1>, vector<8x32xf32>
      %c0_33 = arith.constant 0 : index
      %c0_34 = arith.constant 0 : index
      %46 = vector.load %arg10[%c0_33, %c0_34] : memref<8x24xf32, #tpu.memory_space<vmem>>, vector<8x24xf32>
      %c0_35 = arith.constant 0 : index
      %c0_36 = arith.constant 0 : index
      %47 = vector.load %arg11[%c0_35, %c0_36] : memref<24x32xf32, #tpu.memory_space<vmem>>, vector<24x32xf32>
      %cst_37 = arith.constant dense<0.000000e+00> : vector<8x32xf32>
      %48 = tpu.matmul %46, %47, %cst_37 {dimension_numbers = #tpu.dot_dimension_numbers<[1], [0], [0], [1], [0, 0, 1, 1], [], []>} : vector<8x24xf32>, vector<24x32xf32>, vector<8x32xf32> -> vector<8x32xf32>
      %c0_38 = arith.constant 0 : index
      %c0_39 = arith.constant 0 : index
      %49 = vector.load %arg12[%c0_38, %c0_39] : memref<1x32xf32, #tpu.memory_space<vmem>>, vector<1x32xf32>
      %50 = vector.broadcast %49 : vector<1x32xf32> to vector<8x32xf32>
      %51 = arith.addf %48, %50 : vector<8x32xf32>
      %cst_40 = arith.constant 0.000000e+00 : f32
      %52 = vector.broadcast %cst_40 : f32 to vector<8x32xf32>
      %53 = arith.cmpf ogt, %51, %52 : vector<8x32xf32>
      %cst_41 = arith.constant 0.00999999977 : f32
      %54 = vector.broadcast %cst_41 : f32 to vector<8x32xf32>
      %55 = arith.mulf %54, %51 : vector<8x32xf32>
      %56 = arith.select %53, %51, %55 : vector<8x32xi1>, vector<8x32xf32>
      %c0_42 = arith.constant 0 : index
      %c0_43 = arith.constant 0 : index
      %57 = vector.load %arg13[%c0_42, %c0_43] : memref<32x16xf32, #tpu.memory_space<vmem>>, vector<32x16xf32>
      %cst_44 = arith.constant dense<0.000000e+00> : vector<8x16xf32>
      %58 = tpu.matmul %34, %57, %cst_44 {dimension_numbers = #tpu.dot_dimension_numbers<[1], [0], [0], [1], [0, 0, 1, 1], [], []>} : vector<8x32xf32>, vector<32x16xf32>, vector<8x16xf32> -> vector<8x16xf32>
      %c0_45 = arith.constant 0 : index
      %c0_46 = arith.constant 0 : index
      %59 = vector.load %arg14[%c0_45, %c0_46] : memref<32x16xf32, #tpu.memory_space<vmem>>, vector<32x16xf32>
      %cst_47 = arith.constant dense<0.000000e+00> : vector<8x16xf32>
      %60 = tpu.matmul %45, %59, %cst_47 {dimension_numbers = #tpu.dot_dimension_numbers<[1], [0], [0], [1], [0, 0, 1, 1], [], []>} : vector<8x32xf32>, vector<32x16xf32>, vector<8x16xf32> -> vector<8x16xf32>
      %61 = arith.addf %58, %60 : vector<8x16xf32>
      %c0_48 = arith.constant 0 : index
      %c0_49 = arith.constant 0 : index
      %62 = vector.load %arg15[%c0_48, %c0_49] : memref<32x16xf32, #tpu.memory_space<vmem>>, vector<32x16xf32>
      %cst_50 = arith.constant dense<0.000000e+00> : vector<8x16xf32>
      %63 = tpu.matmul %56, %62, %cst_50 {dimension_numbers = #tpu.dot_dimension_numbers<[1], [0], [0], [1], [0, 0, 1, 1], [], []>} : vector<8x32xf32>, vector<32x16xf32>, vector<8x16xf32> -> vector<8x16xf32>
      %64 = arith.addf %61, %63 : vector<8x16xf32>
      %c0_51 = arith.constant 0 : index
      %c0_52 = arith.constant 0 : index
      %65 = vector.load %arg16[%c0_51, %c0_52] : memref<1x16xf32, #tpu.memory_space<vmem>>, vector<1x16xf32>
      %66 = vector.broadcast %65 : vector<1x16xf32> to vector<8x16xf32>
      %67 = arith.addf %64, %66 : vector<8x16xf32>
      %c0_53 = arith.constant 0 : index
      %c0_54 = arith.constant 0 : index
      %68 = vector.load %arg19[%c0_53, %c0_54] : memref<8x16xf32, #tpu.memory_space<vmem>>, vector<8x16xf32>
      tpu.vector_store %arg19[%c0_53, %c0_54], %67 {strides = array<i32>} : memref<8x16xf32, #tpu.memory_space<vmem>>, vector<8x16xf32>,
    } else {
    }
    %c0 = arith.constant 0 : index
    %c0_1 = arith.constant 0 : index
    %3 = vector.load %arg19[%c0, %c0_1] : memref<8x16xf32, #tpu.memory_space<vmem>>, vector<8x16xf32>
    %c0_2 = arith.constant 0 : index
    %c0_3 = arith.constant 0 : index
    %4 = vector.load %arg17[%c0_2, %c0_3] : memref<16x256xf32, #tpu.memory_space<vmem>>, vector<16x256xf32>
    %cst = arith.constant dense<0.000000e+00> : vector<8x256xf32>
    %5 = tpu.matmul %3, %4, %cst {dimension_numbers = #tpu.dot_dimension_numbers<[1], [0], [0], [1], [0, 0, 1, 1], [], []>} : vector<8x16xf32>, vector<16x256xf32>, vector<8x256xf32> -> vector<8x256xf32>
    %6 = arith.negf %5 : vector<8x256xf32>
    %7 = math.exp %6 : vector<8x256xf32>
    %cst_4 = arith.constant 1.000000e+00 : f32
    %8 = vector.broadcast %cst_4 : f32 to vector<8x256xf32>
    %9 = arith.addf %8, %7 : vector<8x256xf32>
    %10 = arith.divf %8, %9 : vector<8x256xf32>
    %c0_5 = arith.constant 0 : index
    %c0_6 = arith.constant 0 : index
    %11 = vector.load %arg18[%c0_5, %c0_6] : memref<8x256xf32, #tpu.memory_space<vmem>>, vector<8x256xf32>
    tpu.vector_store %arg18[%c0_5, %c0_6], %10 {strides = array<i32>} : memref<8x256xf32, #tpu.memory_space<vmem>>, vector<8x256xf32>,
    return
  }
  func.func @transform_0(%arg0: i32) -> (i32, i32) {
    %c0_i32 = arith.constant 0 : i32
    %c0_i32_0 = arith.constant 0 : i32
    %c0_i32_1 = arith.constant 0 : i32
    return %c0_i32, %c0_i32_0 : i32, i32
  }
  func.func @transform_1(%arg0: i32) -> (i32, i32) {
    %c0_i32 = arith.constant 0 : i32
    %c0_i32_0 = arith.constant 0 : i32
    %c0_i32_1 = arith.constant 0 : i32
    return %c0_i32, %c0_i32_0 : i32, i32
  }
  func.func @transform_2(%arg0: i32) -> (i32, i32) {
    %c0_i32 = arith.constant 0 : i32
    %c0_i32_0 = arith.constant 0 : i32
    %c0_i32_1 = arith.constant 0 : i32
    return %c0_i32, %c0_i32_0 : i32, i32
  }
  func.func @transform_3(%arg0: i32) -> (i32, i32) {
    %c0_i32 = arith.constant 0 : i32
    %c0_i32_0 = arith.constant 0 : i32
    %c0_i32_1 = arith.constant 0 : i32
    return %c0_i32, %c0_i32_0 : i32, i32
  }
  func.func @transform_4(%arg0: i32) -> (i32, i32) {
    %c0_i32 = arith.constant 0 : i32
    %c0_i32_0 = arith.constant 0 : i32
    %c0_i32_1 = arith.constant 0 : i32
    return %c0_i32, %c0_i32_0 : i32, i32
  }
  func.func @transform_5(%arg0: i32) -> (i32, i32) {
    %c0_i32 = arith.constant 0 : i32
    %c0_i32_0 = arith.constant 0 : i32
    %c0_i32_1 = arith.constant 0 : i32
    return %c0_i32, %c0_i32_0 : i32, i32
  }
  func.func @transform_6(%arg0: i32) -> (i32, i32) {
    %c0_i32 = arith.constant 0 : i32
    %c0_i32_0 = arith.constant 0 : i32
    %c0_i32_1 = arith.constant 0 : i32
    return %c0_i32, %c0_i32_0 : i32, i32
  }
  func.func @transform_7(%arg0: i32) -> (i32, i32) {
    %c0_i32 = arith.constant 0 : i32
    %c0_i32_0 = arith.constant 0 : i32
    %c0_i32_1 = arith.constant 0 : i32
    return %c0_i32, %c0_i32_0 : i32, i32
  }
  func.func @transform_8(%arg0: i32) -> (i32, i32) {
    %c0_i32 = arith.constant 0 : i32
    %c0_i32_0 = arith.constant 0 : i32
    %c0_i32_1 = arith.constant 0 : i32
    return %c0_i32, %c0_i32_0 : i32, i32
  }
  func.func @transform_9(%arg0: i32) -> (i32, i32) {
    %c0_i32 = arith.constant 0 : i32
    %c0_i32_0 = arith.constant 0 : i32
    %c0_i32_1 = arith.constant 0 : i32
    return %c0_i32, %c0_i32_0 : i32, i32
  }
  func.func @transform_10(%arg0: i32) -> (i32, i32) {
    %c0_i32 = arith.constant 0 : i32
    %c0_i32_0 = arith.constant 0 : i32
    %c0_i32_1 = arith.constant 0 : i32
    return %c0_i32, %c0_i32_0 : i32, i32
  }
  func.func @transform_11(%arg0: i32) -> (i32, i32) {
    %c0_i32 = arith.constant 0 : i32
    %c0_i32_0 = arith.constant 0 : i32
    %c0_i32_1 = arith.constant 0 : i32
    return %c0_i32, %c0_i32_0 : i32, i32
  }
  func.func @transform_12(%arg0: i32) -> (i32, i32) {
    %c0_i32 = arith.constant 0 : i32
    %c0_i32_0 = arith.constant 0 : i32
    %c0_i32_1 = arith.constant 0 : i32
    return %c0_i32, %c0_i32_0 : i32, i32
  }
  func.func @transform_13(%arg0: i32) -> (i32, i32) {
    %c0_i32 = arith.constant 0 : i32
    %c0_i32_0 = arith.constant 0 : i32
    %c0_i32_1 = arith.constant 0 : i32
    return %c0_i32, %c0_i32_0 : i32, i32
  }
  func.func @transform_14(%arg0: i32) -> (i32, i32) {
    %c0_i32 = arith.constant 0 : i32
    %c0_i32_0 = arith.constant 0 : i32
    %c0_i32_1 = arith.constant 0 : i32
    return %c0_i32, %c0_i32_0 : i32, i32
  }
  func.func @transform_15(%arg0: i32) -> (i32, i32) {
    %c0_i32 = arith.constant 0 : i32
    %c0_i32_0 = arith.constant 0 : i32
    %c0_i32_1 = arith.constant 0 : i32
    return %c0_i32, %c0_i32_0 : i32, i32
  }
  func.func @transform_16(%arg0: i32) -> (i32, i32) {
    %c0_i32 = arith.constant 0 : i32
    %c0_i32_0 = arith.constant 0 : i32
    return %c0_i32, %arg0 : i32, i32
  }
  func.func @transform_17(%arg0: i32) -> (i32, i32) {
    %c0_i32 = arith.constant 0 : i32
    %c0_i32_0 = arith.constant 0 : i32
    return %c0_i32, %arg0 : i32, i32
  }
}

</mosaic_0001>

<bundles_post_ra>
// kernel: _lambda_.1
= control target key start
LH: loop header
LB: loop body
LE: loop exit
PB: predicated region body
PF: predicated region fallthrough
CT: control target
= control target key end

     0   :  { %s5532_s0 = inlined_call_operand.vmem [shape: f32[1536,128], index: 0, kind: input, shape index: {}]   ;;  %s5533_s1 = inlined_call_operand.vmem [shape: f32[128,48], index: 1, kind: input, shape index: {}]   ;;  %s5534_s2 = inlined_call_operand.vmem [shape: f32[192,48], index: 2, kind: input, shape index: {}]   ;;  %s5535_s3 = inlined_call_operand.vmem [shape: f32[1,48], index: 3, kind: input, shape index: {}]   ;;  %s5536_s4 = inlined_call_operand.vmem [shape: f32[48,32], index: 4, kind: input, shape index: {}]   ;;  %s5537_s5 = inlined_call_operand.vmem [shape: f32[1,32], index: 5, kind: input, shape index: {}]   ;;  %s5538_s6 = inlined_call_operand.vmem [shape: f32[8,16], index: 6, kind: input, shape index: {}]   ;;  %s5539_s7 = inlined_call_operand.vmem [shape: f32[16,32], index: 7, kind: input, shape index: {}]   ;;  %s5540_s8 = inlined_call_operand.vmem [shape: f32[1,32], index: 8, kind: input, shape index: {}]   ;;  %s5541_s9 = inlined_call_operand.vmem [shape: f32[8,24], index: 9, kind: input, shape index: {}]   ;;  %s5542_s10 = inlined_call_operand.vmem [shape: f32[24,32], index: 10, kind: input, shape index: {}]   ;;  %s5543_s11 = inlined_call_operand.vmem [shape: f32[1,32], index: 11, kind: input, shape index: {}]   ;;  %s5544_s12 = inlined_call_operand.vmem [shape: f32[32,16], index: 12, kind: input, shape index: {}]   ;;  %s5545_s13 = inlined_call_operand.vmem [shape: f32[32,16], index: 13, kind: input, shape index: {}]   ;;  %s5546_s14 = inlined_call_operand.vmem [shape: f32[32,16], index: 14, kind: input, shape index: {}]   ;;  %s5547_s15 = inlined_call_operand.vmem [shape: f32[1,16], index: 15, kind: input, shape index: {}]   ;;  %s5548_s16 = inlined_call_operand.vmem [shape: f32[16,512], index: 16, kind: input, shape index: {}]   ;;  %s5549_s17 = inlined_call_operand.vmem [shape: f32[8,512], index: 17, kind: output, shape index: {}]  }
   0x1   :  { %5555 = sst [smem:[#allocation7_spill]] %s5532_s0 }
   0x2   :  { %5556 = sst [smem:[#allocation8_spill]] %s5533_s1 }
   0x3   :  { %5557 = sst [smem:[#allocation9_spill]] %s5548_s16 }
   0x4   :  { %s4073_s24 = smov 0   ;;  %s4075_s25 = smov 0  }
   0x5   :  { %s4077_s26 = smov 0  }
   0x6 LB: > { %5558 = sst [smem:[#allocation4_spill]] %s3973_s25  ;;  %s3160_s27 = sadd.s32 4294967295, %s3977_s26   ;;  %s3977_s26 = sphi %s4077_s26, %s5565_s26   ;;  %s3973_s25 = sphi %s4075_s25, %s5567_s25   ;;  %s3969_s24 = sphi %s4073_s24, %s5566_s24  }
   0x7   : > { %s4090_s28 = sadd.s32 1, %s3977_s26   ;;  %s370_s0 = sadd.s32 1, %s3973_s25 }
   0x8   : > { %5559 = sst [smem:[#allocation5_spill]] %s4090_s28  ;;  %s367_s29 = ssub.s32 %s3977_s26, %s4090_s28 }
   0x9   : > { %p368_p0 = scmp.eq.s32.totalorder %s367_s29, 0  ;;  %p377_p1 = scmp.ne.s32.totalorder %s3973_s25, %s3969_s24 }
   0xa   : > { %p378_p2 = scmp.eq.s32.totalorder %s3977_s26, 0  ;;  %p3163_p4 = scmp.ge.s32.totalorder %s3977_s26, 2 }
   0xb   : > { %s4099_s30 = scalar_select %p368_p0, %s3973_s25, %s370_s0  }
   0xc   : > { %p379_p3 = por %p378_p2, %p377_p1  ;;  %477 = sbr.rel (%p3163_p4) target bundleno = 31 (0x1f), region = 80 }
   0xd   : > { %5560 = sst [smem:[#allocation6_spill]] %s4099_s30 }
  0x13   : > { %480 = sbr.rel (!%p379_p3) target bundleno = 31 (0x1f), region = 84  ;;  %s482_s18 = sand.u32 (%p379_p3), 1, %s3973_s25  }
  0x14   : > { %s3188_s19 = sshll.u32 (%p379_p3), %s3977_s26, 4  ;;  %s3164_s1 = sshll.u32 (%p379_p3), %s482_s18, 5 }
  0x15   : > { %s5561_s16 = sld [smem:[#allocation9_spill]] (%p379_p3)  ;;  %s484_s23 = scalar_lea.vmem (%p379_p3), [#allocation3], %s3164_s1 }
  0x1b   : > { %s487_s22 = scalar_lea.vmem %s5561_s16, %s3188_s19 }
  0x1c   : > { %v500_v0 = vld [vmem:[%s487_s22] sm:$0xff]  ;;  %v502_v1 = vld [vmem:[%s487_s22 + $0x8] sm:$0xff] }
  0x1d   : > { %v504_v2 = vld [vmem:[%s487_s22 + $0x20] sm:$0xff]  ;;  %501 = vst [vmem:[%s484_s23] sm:$0xff] %v500_v0  ;;  %503 = vst [vmem:[%s484_s23 + $0x8] sm:$0xff] %v502_v1  ;;  %v506_v3 = vld [vmem:[%s487_s22 + $0x28] sm:$0xff] }
  0x1e   : > { %505 = vst [vmem:[%s484_s23 + $0x10] sm:$0xff] %v504_v2  ;;  %507 = vst [vmem:[%s484_s23 + $0x18] sm:$0xff] %v506_v3 }
  0x1f PF: > { %p3167_p5 = scmp.ge.s32.totalorder %s3977_s26, 1  ;;  %p512_p6 = scmp.lt.s32.totalorder %s3977_s26, 3 }
  0x21   : > { %p513_p7 = pnand %p3167_p5, %p512_p6 }
  0x22   : > { %s519_s29 = sand.u32 (!%p513_p7), 1, %s3969_s24   ;;  %s3169_s0 = sshll.u32 (!%p513_p7), %s3160_s27, 1 }
  0x23   : > { %516 = sbr.rel (%p513_p7) target bundleno = 1236 (0x4d4), region = 107  ;;  %s3168_s18 = sshll.u32 (!%p513_p7), %s519_s29, 5 }
  0x24   : > { %p572_p8 = scmp.lt.s32.totalorder (!%p513_p7), %s3169_s0, 3  ;;  %s4117_s22 = scalar_lea.vmem (!%p513_p7), [#allocation3], %s3168_s18 }
  0x25   : > { %p3171_p9 = scmp.ne.s32.totalorder (!%p513_p7), %s3160_s27, 0 }
  0x2a   : > { %s5569_s0 = smov (!%p572_p8, %s3169_s0), 3  ;;  %580 = sbr.rel (%p3171_p9) target bundleno = 989 (0x3dd), region = 115 }
  0x2b   : > { %s3170_s19 = sshll.u32 %s5569_s0, 3  ;;  %s5562_s24 = sld [smem:[#allocation8_spill]] (!%p3171_p9)  ;;  %vm2030_vm0 = vcmask (!%p3171_p9), 392192   ;;  %vm3980_vm1 = vmmov (!%p3171_p9), 0   ;;  %vm2492_vm2 = vcmask (!%p3171_p9), 1041409   ;;  %vm2495_vm3 = vcmask (!%p3171_p9), 1042434  }
  0x2c   : > { %s4115_s21 = scalar_lea.vmem %s5549_s17, %s3170_s19  ;;  %s5564_s20 = sld [smem:[#allocation7_spill]] (!%p3171_p9)  ;;  %vm2498_vm4 = vcmask (!%p3171_p9), 1043459   ;;  %vm2501_vm5 = vcmask (!%p3171_p9), 1044484   ;;  %vm2504_vm6 = vcmask (!%p3171_p9), 1045509   ;;  %vm2507_vm7 = vcmask (!%p3171_p9), 1046534  }
  0x2d   : > { %vm2510_vm8 = vcmask (!%p3171_p9), 1047559   ;;  %vm2597_vm9 = vcmask (!%p3171_p9), 130048   ;;  %vm2685_vm10 = vcmask (!%p3171_p9), 195584   ;;  %vm2770_vm12 = vcmask (!%p3171_p9), 261120  }
  0x31   : > { %s5563_s30 = smov %s5562_s24  ;;  %v773_v4 = vld [vmem:[%s5562_s24] sm:$0xff] }
  0x32   : > { %v774_v5 = vld [vmem:[%s5563_s30 + $0x8] sm:$0xff]  ;;  %v775_v6 = vld [vmem:[%s5563_s30 + $0x10] sm:$0xff]  ;;  %v776_v8 = vld [vmem:[%s5563_s30 + $0x18] sm:$0xff] }
  0x33   : > { %v3810_v7 = vpack.c.bf16 %v774_v5, %v773_v4  ;;  %v3814_v9 = vpack.c.bf16 %v776_v8, %v775_v6  ;;  %v777_v10 = vld [vmem:[%s5563_s30 + $0x20] sm:$0xff]  ;;  %v778_v11 = vld [vmem:[%s5563_s30 + $0x28] sm:$0xff]  ;;  %v779_v14 = vld [vmem:[%s5563_s30 + $0x30] sm:$0xff] }
  0x34   : > { %v3818_v12 = vpack.c.bf16 %v778_v11, %v777_v10  ;;  %v581_v13 = vld [vmem:[%s5564_s20] sm:$0xff]  ;;  %v780_v15 = vld [vmem:[%s5563_s30 + $0x38] sm:$0xff]  ;;  %v782_v18 = vld [vmem:[%s5563_s30 + $0x48] sm:$0xff] }
  0x35   : > { %3811 = vmatprep.subr.bf16.mxu0 %v3810_v7  ;;  %3879 = vmatprep.subr.bf16.mxu1 %v3810_v7  ;;  %v3822_v16 = vpack.c.bf16 %v780_v15, %v779_v14  ;;  %v781_v17 = vld [vmem:[%s5563_s30 + $0x40] sm:$0xff]  ;;  %v783_v20 = vld [vmem:[%s5563_s30 + $0x50] sm:$0xff]  ;;  %v784_v21 = vld [vmem:[%s5563_s30 + $0x58] sm:$0xff] }
  0x36   : > { %3813 = vmatpush3.bf16.msra.mxu0 %v3810_v7  ;;  %3887 = vmatpush3.bf16.msra.mxu1 %v3810_v7  ;;  %v3826_v19 = vpack.c.bf16 %v782_v18, %v781_v17  ;;  %v687_v22 = vld [vmem:[%s5564_s20 + $0x350] sm:$0xff]  ;;  %v3830_v23 = vpack.c.bf16 %v784_v21, %v783_v20  ;;  %v785_v24 = vld [vmem:[%s5563_s30 + $0x60] sm:$0xff]  ;;  %v786_v25 = vld [vmem:[%s5563_s30 + $0x68] sm:$0xff] }
  0x37   : > { %3815 = vmatprep.subr.bf16.mxu0 %v3814_v9  ;;  %3880 = vmatprep.subr.bf16.mxu1 %v3814_v9  ;;  %v3834_v26 = vpack.c.bf16 %v786_v25, %v785_v24  ;;  %v787_v27 = vld [vmem:[%s5563_s30 + $0x70] sm:$0xff]  ;;  %v788_v28 = vld [vmem:[%s5563_s30 + $0x78] sm:$0xff]  ;;  %v582_v30 = vld [vmem:[%s5564_s20 + $0x8] sm:$0xff] }
  0x38   : > { %3458 = vmatprep.mubr.f32.mxu0 %v581_v13  ;;  %3617 = vmatprep.mubr.f32.mxu1 %v687_v22  ;;  %v3838_v29 = vpack.c.bf16 %v788_v28, %v787_v27  ;;  %v688_v31 = vld [vmem:[%s5564_s20 + $0x358] sm:$0xff]  ;;  %v583_v32 = vld [vmem:[%s5564_s20 + $0x10] sm:$0xff]  ;;  %v689_v33 = vld [vmem:[%s5564_s20 + $0x360] sm:$0xff] }
  0x39   : > { %v584_v34 = vld [vmem:[%s5564_s20 + $0x18] sm:$0xff]  ;;  %v690_v35 = vld [vmem:[%s5564_s20 + $0x368] sm:$0xff]  ;;  %v585_v36 = vld [vmem:[%s5564_s20 + $0x20] sm:$0xff] }
  0x3a   : > { %3817 = vmatpush3.bf16.msra.mxu0 %v3814_v9  ;;  %3888 = vmatpush3.bf16.msra.mxu1 %v3814_v9  ;;  %v691_v37 = vld [vmem:[%s5564_s20 + $0x370] sm:$0xff]  ;;  %v586_v38 = vld [vmem:[%s5564_s20 + $0x28] sm:$0xff]  ;;  %v692_v39 = vld [vmem:[%s5564_s20 + $0x378] sm:$0xff] }
  0x3b   : > { %3819 = vmatprep.subr.bf16.mxu0 %v3818_v12  ;;  %3881 = vmatprep.subr.bf16.mxu1 %v3818_v12  ;;  %v587_v40 = vld [vmem:[%s5564_s20 + $0x30] sm:$0xff]  ;;  %v693_v41 = vld [vmem:[%s5564_s20 + $0x380] sm:$0xff]  ;;  %v588_v42 = vld [vmem:[%s5564_s20 + $0x38] sm:$0xff] }
  0x3c   : > { %v694_v43 = vld [vmem:[%s5564_s20 + $0x388] sm:$0xff]  ;;  %v589_v44 = vld [vmem:[%s5564_s20 + $0x40] sm:$0xff]  ;;  %v695_v45 = vld [vmem:[%s5564_s20 + $0x390] sm:$0xff] }
  0x3d   : > { %v590_v46 = vld [vmem:[%s5564_s20 + $0x48] sm:$0xff]  ;;  %v696_v47 = vld [vmem:[%s5564_s20 + $0x398] sm:$0xff]  ;;  %v591_v48 = vld [vmem:[%s5564_s20 + $0x50] sm:$0xff] }
  0x3e   : > { %3821 = vmatpush3.bf16.msra.mxu0 %v3818_v12  ;;  %3889 = vmatpush3.bf16.msra.mxu1 %v3818_v12  ;;  %v697_v49 = vld [vmem:[%s5564_s20 + $0x3a0] sm:$0xff]  ;;  %v592_v50 = vld [vmem:[%s5564_s20 + $0x58] sm:$0xff]  ;;  %v698_v51 = vld [vmem:[%s5564_s20 + $0x3a8] sm:$0xff] }
  0x3f   : > { %3823 = vmatprep.subr.bf16.mxu0 %v3822_v16  ;;  %3882 = vmatprep.subr.bf16.mxu1 %v3822_v16  ;;  %v593_v52 = vld [vmem:[%s5564_s20 + $0x60] sm:$0xff]  ;;  %v699_v53 = vld [vmem:[%s5564_s20 + $0x3b0] sm:$0xff]  ;;  %v594_v54 = vld [vmem:[%s5564_s20 + $0x68] sm:$0xff] }
  0x40   : > { %v700_v55 = vld [vmem:[%s5564_s20 + $0x3b8] sm:$0xff]  ;;  %v595_v56 = vld [vmem:[%s5564_s20 + $0x70] sm:$0xff]  ;;  %v701_v57 = vld [vmem:[%s5564_s20 + $0x3c0] sm:$0xff] }
  0x41   : > { %v596_v58 = vld [vmem:[%s5564_s20 + $0x78] sm:$0xff]  ;;  %v702_v59 = vld [vmem:[%s5564_s20 + $0x3c8] sm:$0xff]  ;;  %v597_v60 = vld [vmem:[%s5564_s20 + $0x80] sm:$0xff] }
  0x42   : > { %3825 = vmatpush3.bf16.msra.mxu0 %v3822_v16  ;;  %3890 = vmatpush3.bf16.msra.mxu1 %v3822_v16  ;;  %v703_v61 = vld [vmem:[%s5564_s20 + $0x3d0] sm:$0xff]  ;;  %v598_v62 = vld [vmem:[%s5564_s20 + $0x88] sm:$0xff]  ;;  %v704_v63 = vld [vmem:[%s5564_s20 + $0x3d8] sm:$0xff] }
  0x43   : > { %3827 = vmatprep.subr.bf16.mxu0 %v3826_v19  ;;  %3883 = vmatprep.subr.bf16.mxu1 %v3826_v19  ;;  %v599_v0 = vld [vmem:[%s5564_s20 + $0x90] sm:$0xff]  ;;  %v705_v1 = vld [vmem:[%s5564_s20 + $0x3e0] sm:$0xff]  ;;  %v600_v2 = vld [vmem:[%s5564_s20 + $0x98] sm:$0xff] }
  0x44   : > { %v706_v3 = vld [vmem:[%s5564_s20 + $0x3e8] sm:$0xff]  ;;  %v601_v4 = vld [vmem:[%s5564_s20 + $0xa0] sm:$0xff]  ;;  %v707_v5 = vld [vmem:[%s5564_s20 + $0x3f0] sm:$0xff] }
  0x45   : > { %v602_v6 = vld [vmem:[%s5564_s20 + $0xa8] sm:$0xff]  ;;  %v708_v7 = vld [vmem:[%s5564_s20 + $0x3f8] sm:$0xff]  ;;  %v603_v8 = vld [vmem:[%s5564_s20 + $0xb0] sm:$0xff] }
  0x46   : > { %3829 = vmatpush3.bf16.msra.mxu0 %v3826_v19  ;;  %3891 = vmatpush3.bf16.msra.mxu1 %v3826_v19  ;;  %v709_v9 = vld [vmem:[%s5564_s20 + $0x400] sm:$0xff]  ;;  %v604_v10 = vld [vmem:[%s5564_s20 + $0xb8] sm:$0xff]  ;;  %v710_v11 = vld [vmem:[%s5564_s20 + $0x408] sm:$0xff] }
  0x47   : > { %3831 = vmatprep.subr.bf16.mxu0 %v3830_v23  ;;  %3884 = vmatprep.subr.bf16.mxu1 %v3830_v23  ;;  %v605_v12 = vld [vmem:[%s5564_s20 + $0xc0] sm:$0xff]  ;;  %v711_v13 = vld [vmem:[%s5564_s20 + $0x410] sm:$0xff]  ;;  %v606_v14 = vld [vmem:[%s5564_s20 + $0xc8] sm:$0xff] }
  0x48   : > { %v712_v15 = vld [vmem:[%s5564_s20 + $0x418] sm:$0xff]  ;;  %v607_v16 = vld [vmem:[%s5564_s20 + $0xd0] sm:$0xff]  ;;  %v713_v17 = vld [vmem:[%s5564_s20 + $0x420] sm:$0xff] }
  0x49   : > { %v608_v18 = vld [vmem:[%s5564_s20 + $0xd8] sm:$0xff]  ;;  %v714_v19 = vld [vmem:[%s5564_s20 + $0x428] sm:$0xff]  ;;  %v609_v20 = vld [vmem:[%s5564_s20 + $0xe0] sm:$0xff] }
  0x4a   : > { %3833 = vmatpush3.bf16.msra.mxu0 %v3830_v23  ;;  %3892 = vmatpush3.bf16.msra.mxu1 %v3830_v23  ;;  %v715_v21 = vld [vmem:[%s5564_s20 + $0x430] sm:$0xff]  ;;  %v610_v22 = vld [vmem:[%s5564_s20 + $0xe8] sm:$0xff]  ;;  %v716_v23 = vld [vmem:[%s5564_s20 + $0x438] sm:$0xff] }
  0x4b   : > { %3835 = vmatprep.subr.bf16.mxu0 %v3834_v26  ;;  %3885 = vmatprep.subr.bf16.mxu1 %v3834_v26  ;;  %v611_v24 = vld [vmem:[%s5564_s20 + $0xf0] sm:$0xff]  ;;  %v717_v25 = vld [vmem:[%s5564_s20 + $0x440] sm:$0xff]  ;;  %v718_v27 = vld [vmem:[%s5564_s20 + $0x448] sm:$0xff] }
  0x4c   : > { %v613_v28 = vld [vmem:[%s5564_s20 + $0x100] sm:$0xff] }
  0x4e   : > { %3837 = vmatpush3.bf16.msra.mxu0 %v3834_v26  ;;  %3893 = vmatpush3.bf16.msra.mxu1 %v3834_v26  ;;  %v612_v26 = vld [vmem:[%s5564_s20 + $0xf8] sm:$0xff] }
  0x4f   : > { %3839 = vmatprep.subr.bf16.mxu0 %v3838_v29  ;;  %3886 = vmatprep.subr.bf16.mxu1 %v3838_v29 }
  0x52   : > { %3841 = vmatpush3.bf16.msra.mxu0 %v3838_v29  ;;  %3894 = vmatpush3.bf16.msra.mxu1 %v3838_v29  ;;  %v719_v29 = vld [vmem:[%s5564_s20 + $0x450] sm:$0xff] }
  0x55   : > { %3459 = vmatmul.mubr.f32.vlgmr.msra.gmra.mrb[0].mxu0 %v582_v30  ;;  %3618 = vmatmul.mubr.f32.vlgmr.msra.gmra.mrb[0].mxu1 %v688_v31  ;;  %v614_v30 = vld [vmem:[%s5564_s20 + $0x108] sm:$0xff]  ;;  %v720_v31 = vld [vmem:[%s5564_s20 + $0x458] sm:$0xff] }
  0x56   : > { %3461 = vmatprep.mubr.f32.mxu0 %v583_v32  ;;  %3620 = vmatprep.mubr.f32.mxu1 %v689_v33  ;;  %v615_v32 = vld [vmem:[%s5564_s20 + $0x110] sm:$0xff]  ;;  %v721_v33 = vld [vmem:[%s5564_s20 + $0x460] sm:$0xff] }
  0x59   : > { %3462 = vmatmul.mubr.f32.gmra.mrb[2].mxu0 %v584_v34  ;;  %3621 = vmatmul.mubr.f32.gmra.mrb[2].mxu1 %v690_v35  ;;  %v616_v34 = vld [vmem:[%s5564_s20 + $0x118] sm:$0xff]  ;;  %v722_v35 = vld [vmem:[%s5564_s20 + $0x468] sm:$0xff] }
  0x5a   : > { %3464 = vmatprep.mubr.f32.mxu0 %v585_v36  ;;  %3623 = vmatprep.mubr.f32.mxu1 %v691_v37  ;;  %v617_v36 = vld [vmem:[%s5564_s20 + $0x120] sm:$0xff]  ;;  %v723_v37 = vld [vmem:[%s5564_s20 + $0x470] sm:$0xff] }
  0x5d   : > { %3465 = vmatmul.mubr.f32.gmra.mrb[4].mxu0 %v586_v38  ;;  %3624 = vmatmul.mubr.f32.gmra.mrb[4].mxu1 %v692_v39  ;;  %v618_v38 = vld [vmem:[%s5564_s20 + $0x128] sm:$0xff]  ;;  %v724_v39 = vld [vmem:[%s5564_s20 + $0x478] sm:$0xff] }
  0x5e   : > { %3467 = vmatprep.mubr.f32.mxu0 %v587_v40  ;;  %3626 = vmatprep.mubr.f32.mxu1 %v693_v41  ;;  %v619_v40 = vld [vmem:[%s5564_s20 + $0x130] sm:$0xff]  ;;  %v725_v41 = vld [vmem:[%s5564_s20 + $0x480] sm:$0xff] }
  0x61   : > { %3468 = vmatmul.mubr.f32.gmra.mrb[6].mxu0 %v588_v42  ;;  %3627 = vmatmul.mubr.f32.gmra.mrb[6].mxu1 %v694_v43  ;;  %v620_v42 = vld [vmem:[%s5564_s20 + $0x138] sm:$0xff]  ;;  %v726_v43 = vld [vmem:[%s5564_s20 + $0x488] sm:$0xff] }
  0x62   : > { %3470 = vmatprep.mubr.f32.mxu0 %v589_v44  ;;  %3629 = vmatprep.mubr.f32.mxu1 %v695_v45  ;;  %v621_v44 = vld [vmem:[%s5564_s20 + $0x140] sm:$0xff]  ;;  %v727_v45 = vld [vmem:[%s5564_s20 + $0x490] sm:$0xff] }
  0x65   : > { %3471 = vmatmul.mubr.f32.gmra.mrb[8].mxu0 %v590_v46  ;;  %3630 = vmatmul.mubr.f32.gmra.mrb[8].mxu1 %v696_v47  ;;  %v622_v46 = vld [vmem:[%s5564_s20 + $0x148] sm:$0xff]  ;;  %v728_v47 = vld [vmem:[%s5564_s20 + $0x498] sm:$0xff] }
  0x66   : > { %3473 = vmatprep.mubr.f32.mxu0 %v591_v48  ;;  %3632 = vmatprep.mubr.f32.mxu1 %v697_v49  ;;  %v623_v48 = vld [vmem:[%s5564_s20 + $0x150] sm:$0xff]  ;;  %v729_v49 = vld [vmem:[%s5564_s20 + $0x4a0] sm:$0xff] }
  0x69   : > { %3474 = vmatmul.mubr.f32.gmra.mrb[10].mxu0 %v592_v50  ;;  %3633 = vmatmul.mubr.f32.gmra.mrb[10].mxu1 %v698_v51  ;;  %v624_v50 = vld [vmem:[%s5564_s20 + $0x158] sm:$0xff]  ;;  %v730_v51 = vld [vmem:[%s5564_s20 + $0x4a8] sm:$0xff] }
  0x6a   : > { %3476 = vmatprep.mubr.f32.mxu0 %v593_v52  ;;  %3635 = vmatprep.mubr.f32.mxu1 %v699_v53  ;;  %v625_v52 = vld [vmem:[%s5564_s20 + $0x160] sm:$0xff]  ;;  %v731_v53 = vld [vmem:[%s5564_s20 + $0x4b0] sm:$0xff] }
  0x6d   : > { %3477 = vmatmul.mubr.f32.gmra.mrb[12].mxu0 %v594_v54  ;;  %3636 = vmatmul.mubr.f32.gmra.mrb[12].mxu1 %v700_v55  ;;  %v626_v54 = vld [vmem:[%s5564_s20 + $0x168] sm:$0xff]  ;;  %v732_v55 = vld [vmem:[%s5564_s20 + $0x4b8] sm:$0xff] }
  0x6e   : > { %3479 = vmatprep.mubr.f32.mxu0 %v595_v56  ;;  %3638 = vmatprep.mubr.f32.mxu1 %v701_v57  ;;  %v627_v56 = vld [vmem:[%s5564_s20 + $0x170] sm:$0xff]  ;;  %v733_v57 = vld [vmem:[%s5564_s20 + $0x4c0] sm:$0xff] }
  0x71   : > { %3480 = vmatmul.mubr.f32.gmra.mrb[14].mxu0 %v596_v58  ;;  %3639 = vmatmul.mubr.f32.gmra.mrb[14].mxu1 %v702_v59  ;;  %v628_v58 = vld [vmem:[%s5564_s20 + $0x178] sm:$0xff]  ;;  %v734_v59 = vld [vmem:[%s5564_s20 + $0x4c8] sm:$0xff] }
  0x72   : > { %3482 = vmatprep.mubr.f32.mxu0 %v597_v60  ;;  %3641 = vmatprep.mubr.f32.mxu1 %v703_v61  ;;  %v629_v60 = vld [vmem:[%s5564_s20 + $0x180] sm:$0xff]  ;;  %v735_v61 = vld [vmem:[%s5564_s20 + $0x4d0] sm:$0xff] }
  0x75   : > { %3483 = vmatmul.mubr.f32.gmra.mrb[16].mxu0 %v598_v62  ;;  %3642 = vmatmul.mubr.f32.gmra.mrb[16].mxu1 %v704_v63  ;;  %v630_v62 = vld [vmem:[%s5564_s20 + $0x188] sm:$0xff]  ;;  %v736_v63 = vld [vmem:[%s5564_s20 + $0x4d8] sm:$0xff] }
  0x76   : > { %3485 = vmatprep.mubr.f32.mxu0 %v599_v0  ;;  %3644 = vmatprep.mubr.f32.mxu1 %v705_v1  ;;  %v631_v0 = vld [vmem:[%s5564_s20 + $0x190] sm:$0xff]  ;;  %v737_v1 = vld [vmem:[%s5564_s20 + $0x4e0] sm:$0xff] }
  0x79   : > { %3486 = vmatmul.mubr.f32.gmra.mrb[18].mxu0 %v600_v2  ;;  %3645 = vmatmul.mubr.f32.gmra.mrb[18].mxu1 %v706_v3  ;;  %v632_v2 = vld [vmem:[%s5564_s20 + $0x198] sm:$0xff]  ;;  %v738_v3 = vld [vmem:[%s5564_s20 + $0x4e8] sm:$0xff] }
  0x7a   : > { %3488 = vmatprep.mubr.f32.mxu0 %v601_v4  ;;  %3647 = vmatprep.mubr.f32.mxu1 %v707_v5  ;;  %v633_v4 = vld [vmem:[%s5564_s20 + $0x1a0] sm:$0xff]  ;;  %v739_v5 = vld [vmem:[%s5564_s20 + $0x4f0] sm:$0xff] }
  0x7d   : > { %3489 = vmatmul.mubr.f32.gmra.mrb[20].mxu0 %v602_v6  ;;  %3648 = vmatmul.mubr.f32.gmra.mrb[20].mxu1 %v708_v7  ;;  %v634_v6 = vld [vmem:[%s5564_s20 + $0x1a8] sm:$0xff]  ;;  %v740_v7 = vld [vmem:[%s5564_s20 + $0x4f8] sm:$0xff] }
  0x7e   : > { %3491 = vmatprep.mubr.f32.mxu0 %v603_v8  ;;  %3650 = vmatprep.mubr.f32.mxu1 %v709_v9  ;;  %v635_v8 = vld [vmem:[%s5564_s20 + $0x1b0] sm:$0xff]  ;;  %v741_v9 = vld [vmem:[%s5564_s20 + $0x500] sm:$0xff] }
  0x81   : > { %3492 = vmatmul.mubr.f32.gmra.mrb[22].mxu0 %v604_v10  ;;  %3651 = vmatmul.mubr.f32.gmra.mrb[22].mxu1 %v710_v11  ;;  %v636_v10 = vld [vmem:[%s5564_s20 + $0x1b8] sm:$0xff]  ;;  %v742_v11 = vld [vmem:[%s5564_s20 + $0x508] sm:$0xff] }
  0x82   : > { %3494 = vmatprep.mubr.f32.mxu0 %v605_v12  ;;  %3653 = vmatprep.mubr.f32.mxu1 %v711_v13  ;;  %v637_v12 = vld [vmem:[%s5564_s20 + $0x1c0] sm:$0xff]  ;;  %v743_v13 = vld [vmem:[%s5564_s20 + $0x510] sm:$0xff] }
  0x85   : > { %3495 = vmatmul.mubr.f32.gmra.mrb[24].mxu0 %v606_v14  ;;  %3654 = vmatmul.mubr.f32.gmra.mrb[24].mxu1 %v712_v15  ;;  %v638_v14 = vld [vmem:[%s5564_s20 + $0x1c8] sm:$0xff]  ;;  %v744_v15 = vld [vmem:[%s5564_s20 + $0x518] sm:$0xff] }
  0x86   : > { %3497 = vmatprep.mubr.f32.mxu0 %v607_v16  ;;  %3656 = vmatprep.mubr.f32.mxu1 %v713_v17  ;;  %v639_v16 = vld [vmem:[%s5564_s20 + $0x1d0] sm:$0xff]  ;;  %v745_v17 = vld [vmem:[%s5564_s20 + $0x520] sm:$0xff] }
  0x89   : > { %3498 = vmatmul.mubr.f32.gmra.mrb[26].mxu0 %v608_v18  ;;  %3657 = vmatmul.mubr.f32.gmra.mrb[26].mxu1 %v714_v19  ;;  %v640_v18 = vld [vmem:[%s5564_s20 + $0x1d8] sm:$0xff]  ;;  %v746_v19 = vld [vmem:[%s5564_s20 + $0x528] sm:$0xff] }
  0x8a   : > { %3500 = vmatprep.mubr.f32.mxu0 %v609_v20  ;;  %3659 = vmatprep.mubr.f32.mxu1 %v715_v21  ;;  %v641_v20 = vld [vmem:[%s5564_s20 + $0x1e0] sm:$0xff]  ;;  %v747_v21 = vld [vmem:[%s5564_s20 + $0x530] sm:$0xff] }
  0x8d   : > { %3501 = vmatmul.mubr.f32.gmra.mrb[28].mxu0 %v610_v22  ;;  %3660 = vmatmul.mubr.f32.gmra.mrb[28].mxu1 %v716_v23  ;;  %v642_v22 = vld [vmem:[%s5564_s20 + $0x1e8] sm:$0xff]  ;;  %v748_v23 = vld [vmem:[%s5564_s20 + $0x538] sm:$0xff] }
  0x8e   : > { %3503 = vmatprep.mubr.f32.mxu0 %v611_v24  ;;  %3662 = vmatprep.mubr.f32.mxu1 %v717_v25  ;;  %v643_v24 = vld [vmem:[%s5564_s20 + $0x1f0] sm:$0xff]  ;;  %v749_v25 = vld [vmem:[%s5564_s20 + $0x540] sm:$0xff] }
  0x91   : > { %3504 = vmatmul.mubr.f32.gmra.mrb[30].mxu0 %v612_v26  ;;  %3663 = vmatmul.mubr.f32.gmra.mrb[30].mxu1 %v718_v27  ;;  %v644_v26 = vld [vmem:[%s5564_s20 + $0x1f8] sm:$0xff]  ;;  %v750_v27 = vld [vmem:[%s5564_s20 + $0x548] sm:$0xff] }
  0x92   : > { %3506 = vmatprep.mubr.f32.mxu0 %v613_v28  ;;  %3665 = vmatprep.mubr.f32.mxu1 %v719_v29  ;;  %v645_v28 = vld [vmem:[%s5564_s20 + $0x200] sm:$0xff]  ;;  %v751_v29 = vld [vmem:[%s5564_s20 + $0x550] sm:$0xff] }
  0x95   : > { %3507 = vmatmul.mubr.f32.gmra.mrb[32].mxu0 %v614_v30  ;;  %3666 = vmatmul.mubr.f32.gmra.mrb[32].mxu1 %v720_v31  ;;  %v646_v30 = vld [vmem:[%s5564_s20 + $0x208] sm:$0xff]  ;;  %v752_v31 = vld [vmem:[%s5564_s20 + $0x558] sm:$0xff] }
  0x96   : > { %3509 = vmatprep.mubr.f32.mxu0 %v615_v32  ;;  %3668 = vmatprep.mubr.f32.mxu1 %v721_v33  ;;  %v647_v32 = vld [vmem:[%s5564_s20 + $0x210] sm:$0xff]  ;;  %v753_v33 = vld [vmem:[%s5564_s20 + $0x560] sm:$0xff] }
  0x99   : > { %3510 = vmatmul.mubr.f32.gmra.mrb[34].mxu0 %v616_v34  ;;  %3669 = vmatmul.mubr.f32.gmra.mrb[34].mxu1 %v722_v35  ;;  %v648_v34 = vld [vmem:[%s5564_s20 + $0x218] sm:$0xff]  ;;  %v754_v35 = vld [vmem:[%s5564_s20 + $0x568] sm:$0xff] }
  0x9a   : > { %3512 = vmatprep.mubr.f32.mxu0 %v617_v36  ;;  %3671 = vmatprep.mubr.f32.mxu1 %v723_v37  ;;  %v649_v36 = vld [vmem:[%s5564_s20 + $0x220] sm:$0xff]  ;;  %v755_v37 = vld [vmem:[%s5564_s20 + $0x570] sm:$0xff] }
  0x9d   : > { %3513 = vmatmul.mubr.f32.gmra.mrb[36].mxu0 %v618_v38  ;;  %3672 = vmatmul.mubr.f32.gmra.mrb[36].mxu1 %v724_v39  ;;  %v650_v38 = vld [vmem:[%s5564_s20 + $0x228] sm:$0xff]  ;;  %v756_v39 = vld [vmem:[%s5564_s20 + $0x578] sm:$0xff] }
  0x9e   : > { %3515 = vmatprep.mubr.f32.mxu0 %v619_v40  ;;  %3674 = vmatprep.mubr.f32.mxu1 %v725_v41  ;;  %v651_v40 = vld [vmem:[%s5564_s20 + $0x230] sm:$0xff]  ;;  %v757_v41 = vld [vmem:[%s5564_s20 + $0x580] sm:$0xff] }
  0xa1   : > { %3516 = vmatmul.mubr.f32.gmra.mrb[38].mxu0 %v620_v42  ;;  %3675 = vmatmul.mubr.f32.gmra.mrb[38].mxu1 %v726_v43  ;;  %v652_v42 = vld [vmem:[%s5564_s20 + $0x238] sm:$0xff]  ;;  %v758_v43 = vld [vmem:[%s5564_s20 + $0x588] sm:$0xff] }
  0xa2   : > { %3518 = vmatprep.mubr.f32.mxu0 %v621_v44  ;;  %3677 = vmatprep.mubr.f32.mxu1 %v727_v45  ;;  %v653_v44 = vld [vmem:[%s5564_s20 + $0x240] sm:$0xff]  ;;  %v759_v45 = vld [vmem:[%s5564_s20 + $0x590] sm:$0xff] }
  0xa5   : > { %3519 = vmatmul.mubr.f32.gmra.mrb[40].mxu0 %v622_v46  ;;  %3678 = vmatmul.mubr.f32.gmra.mrb[40].mxu1 %v728_v47  ;;  %v654_v46 = vld [vmem:[%s5564_s20 + $0x248] sm:$0xff]  ;;  %v760_v47 = vld [vmem:[%s5564_s20 + $0x598] sm:$0xff] }
  0xa6   : > { %3521 = vmatprep.mubr.f32.mxu0 %v623_v48  ;;  %3680 = vmatprep.mubr.f32.mxu1 %v729_v49  ;;  %v655_v48 = vld [vmem:[%s5564_s20 + $0x250] sm:$0xff]  ;;  %v761_v49 = vld [vmem:[%s5564_s20 + $0x5a0] sm:$0xff] }
  0xa9   : > { %3522 = vmatmul.mubr.f32.gmra.mrb[42].mxu0 %v624_v50  ;;  %3681 = vmatmul.mubr.f32.gmra.mrb[42].mxu1 %v730_v51  ;;  %v656_v50 = vld [vmem:[%s5564_s20 + $0x258] sm:$0xff]  ;;  %v762_v51 = vld [vmem:[%s5564_s20 + $0x5a8] sm:$0xff] }
  0xaa   : > { %3524 = vmatprep.mubr.f32.mxu0 %v625_v52  ;;  %3683 = vmatprep.mubr.f32.mxu1 %v731_v53  ;;  %v657_v52 = vld [vmem:[%s5564_s20 + $0x260] sm:$0xff]  ;;  %v763_v53 = vld [vmem:[%s5564_s20 + $0x5b0] sm:$0xff] }
  0xad   : > { %3525 = vmatmul.mubr.f32.gmra.mrb[44].mxu0 %v626_v54  ;;  %3684 = vmatmul.mubr.f32.gmra.mrb[44].mxu1 %v732_v55  ;;  %v658_v54 = vld [vmem:[%s5564_s20 + $0x268] sm:$0xff]  ;;  %v764_v55 = vld [vmem:[%s5564_s20 + $0x5b8] sm:$0xff] }
  0xae   : > { %3527 = vmatprep.mubr.f32.mxu0 %v627_v56  ;;  %3686 = vmatprep.mubr.f32.mxu1 %v733_v57  ;;  %v659_v56 = vld [vmem:[%s5564_s20 + $0x270] sm:$0xff]  ;;  %v765_v57 = vld [vmem:[%s5564_s20 + $0x5c0] sm:$0xff] }
  0xb1   : > { %3528 = vmatmul.mubr.f32.gmra.mrb[46].mxu0 %v628_v58  ;;  %3687 = vmatmul.mubr.f32.gmra.mrb[46].mxu1 %v734_v59  ;;  %v660_v58 = vld [vmem:[%s5564_s20 + $0x278] sm:$0xff]  ;;  %v766_v59 = vld [vmem:[%s5564_s20 + $0x5c8] sm:$0xff] }
  0xb2   : > { %3530 = vmatprep.mubr.f32.mxu0 %v629_v60  ;;  %3689 = vmatprep.mubr.f32.mxu1 %v735_v61  ;;  %v661_v60 = vld [vmem:[%s5564_s20 + $0x280] sm:$0xff]  ;;  %v767_v61 = vld [vmem:[%s5564_s20 + $0x5d0] sm:$0xff] }
  0xb5   : > { %3531 = vmatmul.mubr.f32.gmra.mrb[48].mxu0 %v630_v62  ;;  %3690 = vmatmul.mubr.f32.gmra.mrb[48].mxu1 %v736_v63  ;;  %v662_v62 = vld [vmem:[%s5564_s20 + $0x288] sm:$0xff]  ;;  %v768_v63 = vld [vmem:[%s5564_s20 + $0x5d8] sm:$0xff] }
  0xb6   : > { %3533 = vmatprep.mubr.f32.mxu0 %v631_v0  ;;  %3692 = vmatprep.mubr.f32.mxu1 %v737_v1  ;;  %v663_v0 = vld [vmem:[%s5564_s20 + $0x290] sm:$0xff]  ;;  %v769_v1 = vld [vmem:[%s5564_s20 + $0x5e0] sm:$0xff] }
  0xb9   : > { %3534 = vmatmul.mubr.f32.gmra.mrb[50].mxu0 %v632_v2  ;;  %3693 = vmatmul.mubr.f32.gmra.mrb[50].mxu1 %v738_v3  ;;  %v664_v2 = vld [vmem:[%s5564_s20 + $0x298] sm:$0xff]  ;;  %v770_v3 = vld [vmem:[%s5564_s20 + $0x5e8] sm:$0xff] }
  0xba   : > { %3536 = vmatprep.mubr.f32.mxu0 %v633_v4  ;;  %3695 = vmatprep.mubr.f32.mxu1 %v739_v5  ;;  %v665_v4 = vld [vmem:[%s5564_s20 + $0x2a0] sm:$0xff]  ;;  %v771_v5 = vld [vmem:[%s5564_s20 + $0x5f0] sm:$0xff] }
  0xbd   : > { %3537 = vmatmul.mubr.f32.gmra.mrb[52].mxu0 %v634_v6  ;;  %3696 = vmatmul.mubr.f32.gmra.mrb[52].mxu1 %v740_v7  ;;  %v666_v6 = vld [vmem:[%s5564_s20 + $0x2a8] sm:$0xff]  ;;  %v772_v7 = vld [vmem:[%s5564_s20 + $0x5f8] sm:$0xff] }
  0xbe   : > { %3539 = vmatprep.mubr.f32.mxu0 %v635_v8  ;;  %3698 = vmatprep.mubr.f32.mxu1 %v741_v9  ;;  %v667_v8 = vld [vmem:[%s5564_s20 + $0x2b0] sm:$0xff]  ;;  %v668_v9 = vld [vmem:[%s5564_s20 + $0x2b8] sm:$0xff] }
  0xc1   : > { %3540 = vmatmul.mubr.f32.gmra.mrb[54].mxu0 %v636_v10  ;;  %3699 = vmatmul.mubr.f32.gmra.mrb[54].mxu1 %v742_v11  ;;  %v669_v10 = vld [vmem:[%s5564_s20 + $0x2c0] sm:$0xff]  ;;  %v670_v11 = vld [vmem:[%s5564_s20 + $0x2c8] sm:$0xff] }
  0xc2   : > { %3542 = vmatprep.mubr.f32.mxu0 %v637_v12  ;;  %3701 = vmatprep.mubr.f32.mxu1 %v743_v13  ;;  %v671_v12 = vld [vmem:[%s5564_s20 + $0x2d0] sm:$0xff]  ;;  %v672_v13 = vld [vmem:[%s5564_s20 + $0x2d8] sm:$0xff] }
  0xc5   : > { %3543 = vmatmul.mubr.f32.gmra.mrb[56].mxu0 %v638_v14  ;;  %3702 = vmatmul.mubr.f32.gmra.mrb[56].mxu1 %v744_v15  ;;  %v673_v14 = vld [vmem:[%s5564_s20 + $0x2e0] sm:$0xff]  ;;  %v3979_v15 = vmov 0.0|0.0  }
  0xc6   : > { %3545 = vmatprep.mubr.f32.mxu0 %v639_v16  ;;  %3704 = vmatprep.mubr.f32.mxu1 %v745_v17  ;;  %v674_v16 = vld [vmem:[%s5564_s20 + $0x2e8] sm:$0xff]  ;;  %v675_v17 = vld [vmem:[%s5564_s20 + $0x2f0] sm:$0xff] }
  0xc7   : > { %3842 = vmatprep.subr.bf16.mxu1 %v3979_v15 }
  0xc9   : > { %3546 = vmatmul.mubr.f32.gmra.mrb[58].mxu0 %v640_v18  ;;  %3705 = vmatmul.mubr.f32.gmra.mrb[58].mxu1 %v746_v19  ;;  %v676_v18 = vld [vmem:[%s5564_s20 + $0x2f8] sm:$0xff]  ;;  %v677_v19 = vld [vmem:[%s5564_s20 + $0x300] sm:$0xff] }
  0xca   : > { %3548 = vmatprep.mubr.f32.mxu0 %v641_v20  ;;  %3707 = vmatprep.mubr.f32.mxu1 %v747_v21  ;;  %v678_v20 = vld [vmem:[%s5564_s20 + $0x308] sm:$0xff]  ;;  %v679_v21 = vld [vmem:[%s5564_s20 + $0x310] sm:$0xff] }
  0xcd   : > { %3549 = vmatmul.mubr.f32.gmra.mrb[60].mxu0 %v642_v22  ;;  %3708 = vmatmul.mubr.f32.gmra.mrb[60].mxu1 %v748_v23  ;;  %v680_v22 = vld [vmem:[%s5564_s20 + $0x318] sm:$0xff]  ;;  %v681_v23 = vld [vmem:[%s5564_s20 + $0x320] sm:$0xff] }
  0xce   : > { %3551 = vmatprep.mubr.f32.mxu0 %v643_v24  ;;  %3710 = vmatprep.mubr.f32.mxu1 %v749_v25  ;;  %v682_v24 = vld [vmem:[%s5564_s20 + $0x328] sm:$0xff]  ;;  %v683_v25 = vld [vmem:[%s5564_s20 + $0x330] sm:$0xff] }
  0xd1   : > { %3552 = vmatmul.mubr.f32.gmra.mrb[62].mxu0 %v644_v26  ;;  %3711 = vmatmul.mubr.f32.gmra.mrb[62].mxu1 %v750_v27  ;;  %v2470_v26 = vld [vmem:[%s5536_s4] sm:$0xff]  ;;  %v2471_v27 = vld [vmem:[%s5536_s4 + $0x8] sm:$0xff] }
  0xd2   : > { %3554 = vmatprep.mubr.f32.mxu0 %v645_v28  ;;  %3713 = vmatprep.mubr.f32.mxu1 %v751_v29  ;;  %v684_v28 = vld [vmem:[%s5564_s20 + $0x338] sm:$0xff]  ;;  %v3843_v29 = vpack.c.bf16 %v2471_v27, %v2470_v26 }
  0xd4   : > { %3844 = vmatpush3.bf16.msra.mxu1 %v3843_v29 }
  0xd5   : > { %3555 = vmatmul.mubr.f32.gmra.mrb[64].mxu0 %v646_v30  ;;  %3714 = vmatmul.mubr.f32.gmra.mrb[64].mxu1 %v752_v31  ;;  %v685_v30 = vld [vmem:[%s5564_s20 + $0x340] sm:$0xff]  ;;  %v686_v31 = vld [vmem:[%s5564_s20 + $0x348] sm:$0xff] }
  0xd6   : > { %3557 = vmatprep.mubr.f32.mxu0 %v647_v32  ;;  %3716 = vmatprep.mubr.f32.mxu1 %v753_v33  ;;  %v4756_v32 = vld [vmem:[%s5534_s2 + $0x8] sm:$0xff]  ;;  %v4761_v33 = vld [vmem:[%s5534_s2] sm:$0xff] }
  0xd7   : > { %3845 = vmatprep.subr.bf16.mxu1 %v3979_v15 }
  0xd9   : > { %3558 = vmatmul.mubr.f32.gmra.mrb[66].mxu0 %v648_v34  ;;  %3717 = vmatmul.mubr.f32.gmra.mrb[66].mxu1 %v754_v35  ;;  %v4766_v35 = vld [vmem:[%s5534_s2 + $0x58] sm:$0xff] }
  0xda   : > { %3560 = vmatprep.mubr.f32.mxu0 %v649_v36  ;;  %3719 = vmatprep.mubr.f32.mxu1 %v755_v37 }
  0xdd   : > { %3561 = vmatmul.mubr.f32.gmra.mrb[68].mxu0 %v650_v38  ;;  %3720 = vmatmul.mubr.f32.gmra.mrb[68].mxu1 %v756_v39  ;;  %v4772_v39 = vld [vmem:[%s5534_s2 + $0x50] sm:$0xff] }
  0xde   : > { %3563 = vmatprep.mubr.f32.mxu0 %v651_v40  ;;  %3722 = vmatprep.mubr.f32.mxu1 %v757_v41 }
  0xe1   : > { %3564 = vmatmul.mubr.f32.gmra.mrb[70].mxu0 %v652_v42  ;;  %3723 = vmatmul.mubr.f32.gmra.mrb[70].mxu1 %v758_v43 }
  0xe2   : > { %3566 = vmatprep.mubr.f32.mxu0 %v653_v44  ;;  %3725 = vmatprep.mubr.f32.mxu1 %v759_v45  ;;  %v4781_v45 = vld [vmem:[%s5534_s2 + $0x18] sm:$0xff] }
  0xe5   : > { %3567 = vmatmul.mubr.f32.gmra.mrb[72].mxu0 %v654_v46  ;;  %3726 = vmatmul.mubr.f32.gmra.mrb[72].mxu1 %v760_v47  ;;  %v4786_v46 = vld [vmem:[%s5534_s2 + $0x10] sm:$0xff] }
  0xe6   : > { %3569 = vmatprep.mubr.f32.mxu0 %v655_v48  ;;  %3728 = vmatprep.mubr.f32.mxu1 %v761_v49 }
  0xe9   : > { %3570 = vmatmul.mubr.f32.gmra.mrb[74].mxu0 %v656_v50  ;;  %3729 = vmatmul.mubr.f32.gmra.mrb[74].mxu1 %v762_v51  ;;  %v4793_v50 = vld [vmem:[%s5534_s2 + $0x68] sm:$0xff] }
  0xea   : > { %3572 = vmatprep.mubr.f32.mxu0 %v657_v52  ;;  %3731 = vmatprep.mubr.f32.mxu1 %v763_v53 }
  0xed   : > { %3573 = vmatmul.mubr.f32.gmra.mrb[76].mxu0 %v658_v54  ;;  %3732 = vmatmul.mubr.f32.gmra.mrb[76].mxu1 %v764_v55  ;;  %v4799_v55 = vld [vmem:[%s5534_s2 + $0x60] sm:$0xff] }
  0xee   : > { %3575 = vmatprep.mubr.f32.mxu0 %v659_v56  ;;  %3734 = vmatprep.mubr.f32.mxu1 %v765_v57 }
  0xf1   : > { %3576 = vmatmul.mubr.f32.gmra.mrb[78].mxu0 %v660_v58  ;;  %3735 = vmatmul.mubr.f32.gmra.mrb[78].mxu1 %v766_v59 }
  0xf2   : > { %3578 = vmatprep.mubr.f32.mxu0 %v661_v60  ;;  %3737 = vmatprep.mubr.f32.mxu1 %v767_v61  ;;  %v4807_v61 = vld [vmem:[%s5534_s2 + $0x28] sm:$0xff] }
  0xf5   : > { %3579 = vmatmul.mubr.f32.gmra.mrb[80].mxu0 %v662_v62  ;;  %3738 = vmatmul.mubr.f32.gmra.mrb[80].mxu1 %v768_v63  ;;  %v4813_v63 = vld [vmem:[%s5534_s2 + $0x20] sm:$0xff] }
  0xf6   : > { %3581 = vmatprep.mubr.f32.mxu0 %v663_v0  ;;  %3740 = vmatprep.mubr.f32.mxu1 %v769_v1 }
  0xf9   : > { %3582 = vmatmul.mubr.f32.gmra.mrb[82].mxu0 %v664_v2  ;;  %3741 = vmatmul.mubr.f32.gmra.mrb[82].mxu1 %v770_v3  ;;  %v4820_v3 = vld [vmem:[%s5534_s2 + $0x78] sm:$0xff] }
  0xfa   : > { %3584 = vmatprep.mubr.f32.mxu0 %v665_v4  ;;  %3743 = vmatprep.mubr.f32.mxu1 %v771_v5 }
  0xfd   : > { %3585 = vmatmul.mubr.f32.gmra.mrb[84].mxu0 %v666_v6  ;;  %3744 = vmatmul.mubr.f32.gmra.mrb[84].mxu1 %v772_v7 }
  0xfe   : > { %3587 = vmatprep.mubr.f32.mxu0 %v667_v8 }
 0x101   : > { %3588 = vmatmul.mubr.f32.gmra.mrb[86].mxu0 %v668_v9 }
 0x102   : > { %3590 = vmatprep.mubr.f32.mxu0 %v669_v10  ;;  %v4827_v10 = vld [vmem:[%s5534_s2 + $0x70] sm:$0xff] }
 0x105   : > { %3591 = vmatmul.mubr.f32.gmra.mrb[88].mxu0 %v670_v11 }
 0x106   : > { %3593 = vmatprep.mubr.f32.mxu0 %v671_v12 }
 0x109   : > { %3594 = vmatmul.mubr.f32.gmra.mrb[90].mxu0 %v672_v13 }
 0x10a   : > { %3596 = vmatprep.mubr.f32.mxu0 %v673_v14 }
 0x10d   : > { %3597 = vmatmul.mubr.f32.gmra.mrb[92].mxu0 %v674_v16 }
 0x10e   : > { %3599 = vmatprep.mubr.f32.mxu0 %v675_v17 }
 0x111   : > { %3600 = vmatmul.mubr.f32.gmra.mrb[94].mxu0 %v676_v18 }
 0x112   : > { %3602 = vmatprep.mubr.f32.mxu0 %v677_v19  ;;  %v4836_v19 = vld [vmem:[%s5534_s2 + $0x38] sm:$0xff] }
 0x115   : > { %3603 = vmatmul.mubr.f32.gmra.mrb[96].mxu0 %v678_v20  ;;  %v4841_v20 = vld [vmem:[%s5534_s2 + $0x30] sm:$0xff] }
 0x116   : > { %3605 = vmatprep.mubr.f32.mxu0 %v679_v21 }
 0x119   : > { %3606 = vmatmul.mubr.f32.gmra.mrb[98].mxu0 %v680_v22 }
 0x11a   : > { %3608 = vmatprep.mubr.f32.mxu0 %v681_v23 }
 0x11d   : > { %3609 = vmatmul.mubr.f32.gmra.mrb[100].mxu0 %v682_v24  ;;  %v4848_v24 = vld [vmem:[%s5534_s2 + $0x88] sm:$0xff] }
 0x11e   : > { %3611 = vmatprep.mubr.f32.mxu0 %v683_v25 }
 0x121   : > { %3612 = vmatmul.mubr.f32.gmra.mrb[102].mxu0 %v684_v28 }
 0x122   : > { %3614 = vmatprep.mubr.f32.mxu0 %v685_v30 }
 0x125   : > { %3615 = vmatmul.mubr.f32.gmra.mrb[104].mxu0 %v686_v31  ;;  %v4855_v31 = vld [vmem:[%s5534_s2 + $0x80] sm:$0xff] }
 0x128   : > { %v3460_v34 = vpop.f32.mrb[0].mxu0  ;;  %v3619_v36 = vpop.f32.mrb[0].mxu1 }
 0x129   : > { %v1839_v37 = vadd.f32 %v3460_v34, %v4756_v32  ;;  %v855_v38 = vpop.f32.mrb[1].mxu0  ;;  %v1945_v40 = vadd.f32 %v3619_v36, %v4766_v35  ;;  %v1385_v41 = vpop.f32.mrb[1].mxu1 }
 0x12a   : > { %v1838_v42 = vadd.f32 %v4761_v33, %v855_v38  ;;  %v1944_v43 = vadd.f32 %v4772_v39, %v1385_v41 }
 0x12b   : > { %v2032_v44 = vsel %vm2030_vm0, %v1839_v37, -inf  ;;  %v2264_v47 = vsel %vm2030_vm0, %v1945_v40, -inf  ;;  %v4863_v40 = vld [vmem:[%s5534_s2 + $0x48] sm:$0xff] }
 0x12c   : > { %v2031_v48 = vsel %vm2030_vm0, %v1838_v42, -inf  ;;  %v3463_v49 = vpop.f32.mrb[2].mxu0  ;;  %v2262_v51 = vsel %vm2030_vm0, %v1944_v43, -inf  ;;  %v3622_v52 = vpop.f32.mrb[2].mxu1 }
 0x12d   : > { %v2033_v53 = vmax.f32 %v2031_v48, %v2032_v44  ;;  %v865_v54 = vpop.f32.mrb[3].mxu0  ;;  %v2263_v56 = vmax.f32 %v2264_v47, %v2262_v51  ;;  %v1947_v57 = vadd.f32 %v3622_v52, %v4793_v50  ;;  %v1395_v58 = vpop.f32.mrb[3].mxu1  ;;  %v1841_v59 = vadd.f32 %v3463_v49, %v4781_v45  ;;  %v4869_v44 = vld [vmem:[%s5534_s2 + $0x40] sm:$0xff]  ;;  %v4876_v51 = vld [vmem:[%s5534_s2 + $0x98] sm:$0xff] }
 0x12e   : > { %v1840_v60 = vadd.f32 %v4786_v46, %v865_v54  ;;  %v1946_v62 = vadd.f32 %v4799_v55, %v1395_v58 }
 0x12f   : > { %v2268_v0 = vsel %vm2030_vm0, %v1947_v57, -inf  ;;  %v2036_v13 = vsel %vm2030_vm0, %v1841_v59, -inf  ;;  %v4883_v59 = vld [vmem:[%s5534_s2 + $0x90] sm:$0xff] }
 0x130   : > { %v2034_v1 = vsel %vm2030_vm0, %v1840_v60, -inf  ;;  %v3466_v2 = vpop.f32.mrb[4].mxu0  ;;  %v2265_v4 = vmax.f32 %v2263_v56, %v2268_v0  ;;  %v2266_v5 = vsel %vm2030_vm0, %v1946_v62, -inf  ;;  %v3625_v6 = vpop.f32.mrb[4].mxu1 }
 0x131   : > { %v2035_v7 = vmax.f32 %v2033_v53, %v2034_v1  ;;  %v1843_v8 = vadd.f32 %v3466_v2, %v4807_v61  ;;  %v875_v9 = vpop.f32.mrb[5].mxu0  ;;  %v1949_v11 = vadd.f32 %v3625_v6, %v4820_v3  ;;  %v1405_v12 = vpop.f32.mrb[5].mxu1 }
 0x132   : > { %v1842_v14 = vadd.f32 %v4813_v63, %v875_v9  ;;  %v2267_v16 = vmax.f32 %v2265_v4, %v2266_v5  ;;  %v1948_v17 = vadd.f32 %v4827_v10, %v1405_v12  ;;  %v4894_v9 = vld [vmem:[%s5534_s2 + $0xa8] sm:$0xff] }
 0x133   : > { %v2037_v18 = vmax.f32 %v2035_v7, %v2036_v13  ;;  %v2272_v21 = vsel %vm2030_vm0, %v1949_v11, -inf  ;;  %v2040_v28 = vsel %vm2030_vm0, %v1843_v8, -inf }
 0x134   : > { %v2038_v22 = vsel %vm2030_vm0, %v1842_v14, -inf  ;;  %v3469_v23 = vpop.f32.mrb[6].mxu0  ;;  %v2269_v25 = vmax.f32 %v2267_v16, %v2272_v21  ;;  %v2270_v26 = vsel %vm2030_vm0, %v1948_v17, -inf  ;;  %v3628_v27 = vpop.f32.mrb[6].mxu1 }
 0x135   : > { %v2039_v29 = vmax.f32 %v2037_v18, %v2038_v22  ;;  %v885_v30 = vpop.f32.mrb[7].mxu0  ;;  %v1951_v34 = vadd.f32 %v3628_v27, %v4848_v24  ;;  %v1415_v36 = vpop.f32.mrb[7].mxu1  ;;  %v1845_v37 = vadd.f32 %v3469_v23, %v4836_v19  ;;  %v4901_v18 = vld [vmem:[%s5534_s2 + $0xa0] sm:$0xff] }
 0x136   : > { %v1844_v38 = vadd.f32 %v4841_v20, %v885_v30  ;;  %v2271_v41 = vmax.f32 %v2269_v25, %v2270_v26  ;;  %v1950_v42 = vadd.f32 %v4855_v31, %v1415_v36  ;;  %v4912_v36 = vld [vmem:[%s5534_s2 + $0xb8] sm:$0xff] }
 0x137   : > { %v2041_v43 = vmax.f32 %v2039_v29, %v2040_v28  ;;  %v2276_v47 = vsel %vm2030_vm0, %v1951_v34, -inf  ;;  %v2044_v0 = vsel %vm2030_vm0, %v1845_v37, -inf }
 0x138   : > { %v2042_v48 = vsel %vm2030_vm0, %v1844_v38, -inf  ;;  %v3472_v49 = vpop.f32.mrb[8].mxu0  ;;  %v2273_v52 = vmax.f32 %v2271_v41, %v2276_v47  ;;  %v2274_v53 = vsel %vm2030_vm0, %v1950_v42, -inf  ;;  %v3631_v54 = vpop.f32.mrb[8].mxu1 }
 0x139   : > { %v2043_v56 = vmax.f32 %v2041_v43, %v2042_v48  ;;  %v1847_v57 = vadd.f32 %v3472_v49, %v4863_v40  ;;  %v895_v58 = vpop.f32.mrb[9].mxu0  ;;  %v1953_v60 = vadd.f32 %v3631_v54, %v4876_v51  ;;  %v1425_v62 = vpop.f32.mrb[9].mxu1  ;;  %v4919_v48 = vld [vmem:[%s5534_s2 + $0xb0] sm:$0xff] }
 0x13a   : > { %v1846_v1 = vadd.f32 %v4869_v44, %v895_v58  ;;  %v2275_v2 = vmax.f32 %v2273_v52, %v2274_v53  ;;  %v1952_v4 = vadd.f32 %v4883_v59, %v1425_v62 }
 0x13b   : > { %v2045_v5 = vmax.f32 %v2043_v56, %v2044_v0  ;;  %v2280_v6 = vsel %vm2030_vm0, %v1953_v60, -inf  ;;  %v2048_v14 = vsel %vm2030_vm0, %v1847_v57, -inf }
 0x13c   : > { %v2046_v7 = vsel %vm2030_vm0, %v1846_v1, -inf  ;;  %v3475_v8 = vpop.f32.mrb[10].mxu0  ;;  %v2277_v11 = vmax.f32 %v2275_v2, %v2280_v6  ;;  %v2278_v12 = vsel %vm2030_vm0, %v1952_v4, -inf  ;;  %v3634_v13 = vpop.f32.mrb[10].mxu1 }
 0x13d   : > { %v2047_v16 = vmax.f32 %v2045_v5, %v2046_v7  ;;  %v905_v17 = vpop.f32.mrb[11].mxu0  ;;  %v1955_v21 = vadd.f32 %v3634_v13, %v4894_v9  ;;  %v1435_v22 = vpop.f32.mrb[11].mxu1  ;;  %v1849_v23 = vadd.f32 %v3475_v8, %v4766_v35 }
 0x13e   : > { %v1848_v25 = vadd.f32 %v4772_v39, %v905_v17  ;;  %v2279_v26 = vmax.f32 %v2277_v11, %v2278_v12  ;;  %v1954_v27 = vadd.f32 %v4901_v18, %v1435_v22 }
 0x13f   : > { %v2049_v28 = vmax.f32 %v2047_v16, %v2048_v14  ;;  %v2284_v29 = vsel %vm2030_vm0, %v1955_v21, -inf  ;;  %v2052_v53 = vsel %vm2030_vm0, %v1849_v23, -inf }
 0x140   : > { %v2050_v30 = vsel %vm2030_vm0, %v1848_v25, -inf  ;;  %v3478_v34 = vpop.f32.mrb[12].mxu0  ;;  %v2281_v37 = vmax.f32 %v2279_v26, %v2284_v29  ;;  %v2282_v38 = vsel %vm2030_vm0, %v1954_v27, -inf  ;;  %v3637_v41 = vpop.f32.mrb[12].mxu1 }
 0x141   : > { %v2051_v42 = vmax.f32 %v2049_v28, %v2050_v30  ;;  %v1851_v43 = vadd.f32 %v3478_v34, %v4793_v50  ;;  %v915_v47 = vpop.f32.mrb[13].mxu0  ;;  %v1957_v49 = vadd.f32 %v3637_v41, %v4912_v36  ;;  %v1445_v52 = vpop.f32.mrb[13].mxu1 }
 0x142   : > { %v1850_v54 = vadd.f32 %v4799_v55, %v915_v47  ;;  %v2283_v56 = vmax.f32 %v2281_v37, %v2282_v38  ;;  %v1956_v57 = vadd.f32 %v4919_v48, %v1445_v52 }
 0x143   : > { %v2053_v58 = vmax.f32 %v2051_v42, %v2052_v53  ;;  %v2288_v60 = vsel %vm2030_vm0, %v1957_v49, -inf  ;;  %v2056_v5 = vsel %vm2030_vm0, %v1851_v43, -inf }
 0x144   : > { %v2054_v62 = vsel %vm2030_vm0, %v1850_v54, -inf  ;;  %v3481_v0 = vpop.f32.mrb[14].mxu0  ;;  %v4927_v1 = vmax.f32 %v2283_v56, %v2288_v60  ;;  %v4930_v2 = vsel %vm2030_vm0, %v1956_v57, -inf  ;;  %v3640_v4 = vpop.f32.mrb[14].mxu1 }
 0x145   : > { %v2055_v6 = vmax.f32 %v2053_v58, %v2054_v62  ;;  %v925_v7 = vpop.f32.mrb[15].mxu0  ;;  %v1959_v8 = vadd.f32 %v3640_v4, %v4756_v32  ;;  %v1455_v11 = vpop.f32.mrb[15].mxu1  ;;  %v1853_v12 = vadd.f32 %v3481_v0, %v4820_v3  ;;  %v2472_v4 = vld [vmem:[%s5536_s4 + $0x10] sm:$0xff] }
 0x146   : > { %v1852_v13 = vadd.f32 %v4827_v10, %v925_v7  ;;  %v2287_v14 = vmax.f32 %v4927_v1, %v4930_v2  ;;  %v1958_v16 = vadd.f32 %v4761_v33, %v1455_v11 }
 0x147   : > { %v2057_v17 = vmax.f32 %v2055_v6, %v2056_v5  ;;  %v2297_v21 = vsel %vm2030_vm0, %v1959_v8, -inf  ;;  %v2060_v38 = vsel %vm2030_vm0, %v1853_v12, -inf  ;;  %v2473_v5 = vld [vmem:[%s5536_s4 + $0x18] sm:$0xff] }
 0x148   : > { %v2058_v22 = vsel %vm2030_vm0, %v1852_v13, -inf  ;;  %v3484_v23 = vpop.f32.mrb[16].mxu0  ;;  %v2296_v25 = vsel %vm2030_vm0, %v1958_v16, -inf  ;;  %v3643_v26 = vpop.f32.mrb[16].mxu1  ;;  %v3846_v11 = vpack.c.bf16 %v2473_v5, %v2472_v4 }
 0x149   : > { %v2059_v27 = vmax.f32 %v2057_v17, %v2058_v22  ;;  %v1855_v28 = vadd.f32 %v3484_v23, %v4848_v24  ;;  %v935_v29 = vpop.f32.mrb[17].mxu0  ;;  %v2298_v30 = vmax.f32 %v2296_v25, %v2297_v21  ;;  %v1961_v34 = vadd.f32 %v3643_v26, %v4781_v45  ;;  %v1465_v37 = vpop.f32.mrb[17].mxu1 }
 0x14a   : > { %v1854_v41 = vadd.f32 %v4855_v31, %v935_v29  ;;  %v1960_v42 = vadd.f32 %v4786_v46, %v1465_v37  ;;  %3847 = vmatpush3.bf16.msra.mxu1 %v3846_v11 }
 0x14b   : > { %v2061_v43 = vmax.f32 %v2059_v27, %v2060_v38  ;;  %v2301_v52 = vsel %vm2030_vm0, %v1961_v34, -inf  ;;  %v2064_v56 = vsel %vm2030_vm0, %v1855_v28, -inf  ;;  %3848 = vmatprep.subr.bf16.mxu1 %v3979_v15 }
 0x14c   : > { %v2062_v47 = vsel %vm2030_vm0, %v1854_v41, -inf  ;;  %v3487_v49 = vpop.f32.mrb[18].mxu0  ;;  %v2299_v53 = vsel %vm2030_vm0, %v1960_v42, -inf  ;;  %v3646_v54 = vpop.f32.mrb[18].mxu1 }
 0x14d   : > { %v2063_v57 = vmax.f32 %v2061_v43, %v2062_v47  ;;  %v945_v58 = vpop.f32.mrb[19].mxu0  ;;  %v2300_v60 = vmax.f32 %v2298_v30, %v2299_v53  ;;  %v1963_v62 = vadd.f32 %v3646_v54, %v4807_v61  ;;  %v1475_v0 = vpop.f32.mrb[19].mxu1  ;;  %v1857_v6 = vadd.f32 %v3487_v49, %v4876_v51 }
 0x14e   : > { %v1856_v7 = vadd.f32 %v4883_v59, %v945_v58  ;;  %v1962_v8 = vadd.f32 %v4813_v63, %v1475_v0 }
 0x14f   : > { %v2065_v12 = vmax.f32 %v2063_v57, %v2064_v56  ;;  %v2302_v13 = vmax.f32 %v2300_v60, %v2301_v52  ;;  %v2305_v21 = vsel %vm2030_vm0, %v1963_v62, -inf  ;;  %v2068_v30 = vsel %vm2030_vm0, %v1857_v6, -inf }
 0x150   : > { %v2066_v16 = vsel %vm2030_vm0, %v1856_v7, -inf  ;;  %v3490_v17 = vpop.f32.mrb[20].mxu0  ;;  %v2303_v22 = vsel %vm2030_vm0, %v1962_v8, -inf  ;;  %v3649_v23 = vpop.f32.mrb[20].mxu1 }
 0x151   : > { %v2067_v25 = vmax.f32 %v2065_v12, %v2066_v16  ;;  %v955_v26 = vpop.f32.mrb[21].mxu0  ;;  %v2304_v27 = vmax.f32 %v2302_v13, %v2303_v22  ;;  %v1965_v28 = vadd.f32 %v3649_v23, %v4836_v19  ;;  %v1485_v29 = vpop.f32.mrb[21].mxu1  ;;  %v1859_v34 = vadd.f32 %v3490_v17, %v4894_v9 }
 0x152   : > { %v1858_v37 = vadd.f32 %v4901_v18, %v955_v26  ;;  %v1964_v38 = vadd.f32 %v4841_v20, %v1485_v29 }
 0x153   : > { %v2069_v41 = vmax.f32 %v2067_v25, %v2068_v30  ;;  %v2306_v42 = vmax.f32 %v2304_v27, %v2305_v21  ;;  %v2309_v49 = vsel %vm2030_vm0, %v1965_v28, -inf  ;;  %v2072_v62 = vsel %vm2030_vm0, %v1859_v34, -inf }
 0x154   : > { %v2070_v43 = vsel %vm2030_vm0, %v1858_v37, -inf  ;;  %v3493_v47 = vpop.f32.mrb[22].mxu0  ;;  %v2307_v52 = vsel %vm2030_vm0, %v1964_v38, -inf  ;;  %v3652_v53 = vpop.f32.mrb[22].mxu1 }
 0x155   : > { %v2071_v54 = vmax.f32 %v2069_v41, %v2070_v43  ;;  %v965_v56 = vpop.f32.mrb[23].mxu0  ;;  %v2308_v57 = vmax.f32 %v2306_v42, %v2307_v52  ;;  %v1967_v58 = vadd.f32 %v3652_v53, %v4863_v40  ;;  %v1495_v60 = vpop.f32.mrb[23].mxu1  ;;  %v1861_v0 = vadd.f32 %v3493_v47, %v4912_v36 }
 0x156   : > { %v1860_v4 = vadd.f32 %v4919_v48, %v965_v56  ;;  %v1966_v5 = vadd.f32 %v4869_v44, %v1495_v60 }
 0x157   : > { %v2073_v6 = vmax.f32 %v2071_v54, %v2072_v62  ;;  %v2310_v7 = vmax.f32 %v2308_v57, %v2309_v49  ;;  %v2313_v12 = vsel %vm2030_vm0, %v1967_v58, -inf  ;;  %v2076_v27 = vsel %vm2030_vm0, %v1861_v0, -inf }
 0x158   : > { %v2074_v8 = vsel %vm2030_vm0, %v1860_v4, -inf  ;;  %v3496_v11 = vpop.f32.mrb[24].mxu0  ;;  %v2311_v13 = vsel %vm2030_vm0, %v1966_v5, -inf  ;;  %v3655_v16 = vpop.f32.mrb[24].mxu1 }
 0x159   : > { %v2075_v17 = vmax.f32 %v2073_v6, %v2074_v8  ;;  %v1863_v21 = vadd.f32 %v3496_v11, %v4756_v32  ;;  %v975_v22 = vpop.f32.mrb[25].mxu0  ;;  %v2312_v23 = vmax.f32 %v2310_v7, %v2311_v13  ;;  %v1969_v25 = vadd.f32 %v3655_v16, %v4766_v35  ;;  %v1505_v26 = vpop.f32.mrb[25].mxu1 }
 0x15a   : > { %v1862_v28 = vadd.f32 %v4761_v33, %v975_v22  ;;  %v1968_v29 = vadd.f32 %v4772_v39, %v1505_v26 }
 0x15b   : > { %v4986_v30 = vmax.f32 %v2075_v17, %v2076_v27  ;;  %v2085_v34 = vsel %vm2030_vm0, %v1863_v21, -inf  ;;  %v2314_v37 = vmax.f32 %v2312_v23, %v2313_v12  ;;  %v2317_v42 = vsel %vm2030_vm0, %v1969_v25, -inf }
 0x15c   : > { %v2084_v38 = vsel %vm2030_vm0, %v1862_v28, -inf  ;;  %v3499_v41 = vpop.f32.mrb[26].mxu0  ;;  %v2315_v43 = vsel %vm2030_vm0, %v1968_v29, -inf  ;;  %v3658_v47 = vpop.f32.mrb[26].mxu1 }
 0x15d   : > { %v2086_v49 = vmax.f32 %v2084_v38, %v2085_v34  ;;  %v1865_v52 = vadd.f32 %v3499_v41, %v4781_v45  ;;  %v985_v53 = vpop.f32.mrb[27].mxu0  ;;  %v2316_v54 = vmax.f32 %v2314_v37, %v2315_v43  ;;  %v1515_v56 = vpop.f32.mrb[27].mxu1  ;;  %v1971_v58 = vadd.f32 %v3658_v47, %v4793_v50 }
 0x15e   : > { %v1864_v57 = vadd.f32 %v4786_v46, %v985_v53  ;;  %v1970_v60 = vadd.f32 %v4799_v55, %v1515_v56 }
 0x15f   : > { %v2318_v62 = vmax.f32 %v2316_v54, %v2317_v42  ;;  %v2321_v5 = vsel %vm2030_vm0, %v1971_v58, -inf  ;;  %v2089_v8 = vsel %vm2030_vm0, %v1865_v52, -inf }
 0x160   : > { %v2087_v0 = vsel %vm2030_vm0, %v1864_v57, -inf  ;;  %v3502_v4 = vpop.f32.mrb[28].mxu0  ;;  %v2319_v6 = vsel %vm2030_vm0, %v1970_v60, -inf  ;;  %v3661_v7 = vpop.f32.mrb[28].mxu1 }
 0x161   : > { %v2088_v11 = vmax.f32 %v2086_v49, %v2087_v0  ;;  %v995_v12 = vpop.f32.mrb[29].mxu0  ;;  %v2320_v13 = vmax.f32 %v2318_v62, %v2319_v6  ;;  %v1525_v16 = vpop.f32.mrb[29].mxu1  ;;  %v1867_v17 = vadd.f32 %v3502_v4, %v4807_v61  ;;  %v1973_v22 = vadd.f32 %v3661_v7, %v4820_v3 }
 0x162   : > { %v1866_v21 = vadd.f32 %v4813_v63, %v995_v12  ;;  %v1972_v23 = vadd.f32 %v4827_v10, %v1525_v16 }
 0x163   : > { %v2090_v25 = vmax.f32 %v2088_v11, %v2089_v8  ;;  %v2322_v26 = vmax.f32 %v2320_v13, %v2321_v5  ;;  %v2325_v29 = vsel %vm2030_vm0, %v1973_v22, -inf  ;;  %v2093_v49 = vsel %vm2030_vm0, %v1867_v17, -inf }
 0x164   : > { %v2091_v27 = vsel %vm2030_vm0, %v1866_v21, -inf  ;;  %v3505_v28 = vpop.f32.mrb[30].mxu0  ;;  %v2323_v34 = vsel %vm2030_vm0, %v1972_v23, -inf  ;;  %v3664_v37 = vpop.f32.mrb[30].mxu1 }
 0x165   : > { %v2092_v38 = vmax.f32 %v2090_v25, %v2091_v27  ;;  %v1869_v41 = vadd.f32 %v3505_v28, %v4836_v19  ;;  %v1005_v42 = vpop.f32.mrb[31].mxu0  ;;  %v2324_v43 = vmax.f32 %v2322_v26, %v2323_v34  ;;  %v1535_v47 = vpop.f32.mrb[31].mxu1  ;;  %v1975_v53 = vadd.f32 %v3664_v37, %v4848_v24 }
 0x166   : > { %v1868_v52 = vadd.f32 %v4841_v20, %v1005_v42  ;;  %v1974_v54 = vadd.f32 %v4855_v31, %v1535_v47 }
 0x167   : > { %v2094_v56 = vmax.f32 %v2092_v38, %v2093_v49  ;;  %v2326_v57 = vmax.f32 %v2324_v43, %v2325_v29  ;;  %v2329_v62 = vsel %vm2030_vm0, %v1975_v53, -inf  ;;  %v2097_v5 = vsel %vm2030_vm0, %v1869_v41, -inf }
 0x168   : > { %v2095_v58 = vsel %vm2030_vm0, %v1868_v52, -inf  ;;  %v3508_v60 = vpop.f32.mrb[32].mxu0  ;;  %v2327_v0 = vsel %vm2030_vm0, %v1974_v54, -inf  ;;  %v3667_v4 = vpop.f32.mrb[32].mxu1 }
 0x169   : > { %v2096_v6 = vmax.f32 %v2094_v56, %v2095_v58  ;;  %v1015_v7 = vpop.f32.mrb[33].mxu0  ;;  %v2328_v8 = vmax.f32 %v2326_v57, %v2327_v0  ;;  %v1545_v11 = vpop.f32.mrb[33].mxu1  ;;  %v1871_v12 = vadd.f32 %v3508_v60, %v4863_v40  ;;  %v1977_v16 = vadd.f32 %v3667_v4, %v4876_v51 }
 0x16a   : > { %v1870_v13 = vadd.f32 %v4869_v44, %v1015_v7  ;;  %v1976_v17 = vadd.f32 %v4883_v59, %v1545_v11 }
 0x16b   : > { %v2098_v21 = vmax.f32 %v2096_v6, %v2097_v5  ;;  %v2330_v22 = vmax.f32 %v2328_v8, %v2329_v62  ;;  %v2333_v26 = vsel %vm2030_vm0, %v1977_v16, -inf  ;;  %v2101_v42 = vsel %vm2030_vm0, %v1871_v12, -inf }
 0x16c   : > { %v2099_v23 = vsel %vm2030_vm0, %v1870_v13, -inf  ;;  %v3511_v25 = vpop.f32.mrb[34].mxu0  ;;  %v2331_v27 = vsel %vm2030_vm0, %v1976_v17, -inf  ;;  %v3670_v28 = vpop.f32.mrb[34].mxu1 }
 0x16d   : > { %v2100_v29 = vmax.f32 %v2098_v21, %v2099_v23  ;;  %v1025_v34 = vpop.f32.mrb[35].mxu0  ;;  %v2332_v37 = vmax.f32 %v2330_v22, %v2331_v27  ;;  %v1979_v38 = vadd.f32 %v3670_v28, %v4894_v9  ;;  %v1555_v41 = vpop.f32.mrb[35].mxu1  ;;  %v1873_v43 = vadd.f32 %v3511_v25, %v4766_v35 }
 0x16e   : > { %v1872_v47 = vadd.f32 %v4772_v39, %v1025_v34  ;;  %v1978_v49 = vadd.f32 %v4901_v18, %v1555_v41 }
 0x16f   : > { %v2102_v52 = vmax.f32 %v2100_v29, %v2101_v42  ;;  %v2334_v53 = vmax.f32 %v2332_v37, %v2333_v26  ;;  %v2337_v57 = vsel %vm2030_vm0, %v1979_v38, -inf  ;;  %v2105_v7 = vsel %vm2030_vm0, %v1873_v43, -inf }
 0x170   : > { %v2103_v54 = vsel %vm2030_vm0, %v1872_v47, -inf  ;;  %v3514_v56 = vpop.f32.mrb[36].mxu0  ;;  %v2335_v58 = vsel %vm2030_vm0, %v1978_v49, -inf  ;;  %v3673_v60 = vpop.f32.mrb[36].mxu1 }
 0x171   : > { %v2104_v62 = vmax.f32 %v2102_v52, %v2103_v54  ;;  %v1035_v0 = vpop.f32.mrb[37].mxu0  ;;  %v2336_v4 = vmax.f32 %v2334_v53, %v2335_v58  ;;  %v1981_v5 = vadd.f32 %v3673_v60, %v4912_v36  ;;  %v1565_v6 = vpop.f32.mrb[37].mxu1  ;;  %v1875_v8 = vadd.f32 %v3514_v56, %v4793_v50 }
 0x172   : > { %v1874_v11 = vadd.f32 %v4799_v55, %v1035_v0  ;;  %v1980_v12 = vadd.f32 %v4919_v48, %v1565_v6 }
 0x173   : > { %v2106_v13 = vmax.f32 %v2104_v62, %v2105_v7  ;;  %v2338_v16 = vmax.f32 %v2336_v4, %v2337_v57  ;;  %v2341_v22 = vsel %vm2030_vm0, %v1981_v5, -inf  ;;  %v2109_v38 = vsel %vm2030_vm0, %v1875_v8, -inf }
 0x174   : > { %v2107_v17 = vsel %vm2030_vm0, %v1874_v11, -inf  ;;  %v3517_v21 = vpop.f32.mrb[38].mxu0  ;;  %v2339_v23 = vsel %vm2030_vm0, %v1980_v12, -inf  ;;  %v3676_v25 = vpop.f32.mrb[38].mxu1  ;;  %v2474_v11 = vld [vmem:[%s5536_s4 + $0x20] sm:$0xff]  ;;  %v2475_v12 = vld [vmem:[%s5536_s4 + $0x28] sm:$0xff] }
 0x175   : > { %v2108_v26 = vmax.f32 %v2106_v13, %v2107_v17  ;;  %v1877_v27 = vadd.f32 %v3517_v21, %v4820_v3  ;;  %v1045_v28 = vpop.f32.mrb[39].mxu0  ;;  %v2340_v29 = vmax.f32 %v2338_v16, %v2339_v23  ;;  %v1983_v34 = vadd.f32 %v3676_v25, %v4756_v32  ;;  %v1575_v37 = vpop.f32.mrb[39].mxu1 }
 0x176   : > { %v1876_v41 = vadd.f32 %v4827_v10, %v1045_v28  ;;  %v1982_v42 = vadd.f32 %v4761_v33, %v1575_v37  ;;  %v3849_v23 = vpack.c.bf16 %v2475_v12, %v2474_v11 }
 0x177   : > { %v2110_v43 = vmax.f32 %v2108_v26, %v2109_v38  ;;  %v5044_v47 = vmax.f32 %v2340_v29, %v2341_v22  ;;  %v2350_v49 = vsel %vm2030_vm0, %v1983_v34, -inf  ;;  %v2113_v57 = vsel %vm2030_vm0, %v1877_v27, -inf }
 0x178   : > { %v2111_v52 = vsel %vm2030_vm0, %v1876_v41, -inf  ;;  %v3520_v53 = vpop.f32.mrb[40].mxu0  ;;  %v2349_v54 = vsel %vm2030_vm0, %v1982_v42, -inf  ;;  %v3679_v56 = vpop.f32.mrb[40].mxu1  ;;  %3850 = vmatpush3.bf16.msra.mxu1 %v3849_v23 }
 0x179   : > { %v2112_v58 = vmax.f32 %v2110_v43, %v2111_v52  ;;  %v1055_v60 = vpop.f32.mrb[41].mxu0  ;;  %v2351_v62 = vmax.f32 %v2349_v54, %v2350_v49  ;;  %v1585_v0 = vpop.f32.mrb[41].mxu1  ;;  %v1879_v4 = vadd.f32 %v3520_v53, %v4848_v24  ;;  %v1985_v6 = vadd.f32 %v3679_v56, %v4781_v45  ;;  %3851 = vmatprep.subr.bf16.mxu1 %v3979_v15 }
 0x17a   : > { %v1878_v5 = vadd.f32 %v4855_v31, %v1055_v60  ;;  %v1984_v7 = vadd.f32 %v4786_v46, %v1585_v0 }
 0x17b   : > { %v2114_v8 = vmax.f32 %v2112_v58, %v2113_v57  ;;  %v2354_v17 = vsel %vm2030_vm0, %v1985_v6, -inf  ;;  %v2117_v34 = vsel %vm2030_vm0, %v1879_v4, -inf }
 0x17c   : > { %v2115_v13 = vsel %vm2030_vm0, %v1878_v5, -inf  ;;  %v3523_v16 = vpop.f32.mrb[42].mxu0  ;;  %v2352_v21 = vsel %vm2030_vm0, %v1984_v7, -inf  ;;  %v3682_v22 = vpop.f32.mrb[42].mxu1 }
 0x17d   : > { %v2116_v25 = vmax.f32 %v2114_v8, %v2115_v13  ;;  %v1881_v26 = vadd.f32 %v3523_v16, %v4876_v51  ;;  %v1065_v27 = vpop.f32.mrb[43].mxu0  ;;  %v2353_v28 = vmax.f32 %v2351_v62, %v2352_v21  ;;  %v1595_v29 = vpop.f32.mrb[43].mxu1  ;;  %v1987_v38 = vadd.f32 %v3682_v22, %v4807_v61 }
 0x17e   : > { %v1880_v37 = vadd.f32 %v4883_v59, %v1065_v27  ;;  %v1986_v41 = vadd.f32 %v4813_v63, %v1595_v29  ;;  %v2078_v8 = vrot.slane %v4986_v30, 4  ;;  %v3981_v29 = vmov 0.0  }
 0x17f   : > { %v2118_v42 = vmax.f32 %v2116_v25, %v2117_v34  ;;  %v2355_v43 = vmax.f32 %v2353_v28, %v2354_v17  ;;  %v2358_v53 = vsel %vm2030_vm0, %v1987_v38, -inf  ;;  %v2121_v57 = vsel %vm2030_vm0, %v1881_v26, -inf  ;;  %3758 = vmatprep.mubr.msk.f32.mxu1 %vm3980_vm1, %v3981_v29 }
 0x180   : > { %v2119_v49 = vsel %vm2030_vm0, %v1880_v37, -inf  ;;  %v3526_v52 = vpop.f32.mrb[44].mxu0  ;;  %v2356_v54 = vsel %vm2030_vm0, %v1986_v41, -inf  ;;  %v3685_v56 = vpop.f32.mrb[44].mxu1 }
 0x181   : > { %v2120_v58 = vmax.f32 %v2118_v42, %v2119_v49  ;;  %v1883_v60 = vadd.f32 %v3526_v52, %v4894_v9  ;;  %v1075_v62 = vpop.f32.mrb[45].mxu0  ;;  %v2357_v0 = vmax.f32 %v2355_v43, %v2356_v54  ;;  %v1605_v4 = vpop.f32.mrb[45].mxu1  ;;  %v1989_v6 = vadd.f32 %v3685_v56, %v4836_v19 }
 0x182   : > { %v1882_v5 = vadd.f32 %v4901_v18, %v1075_v62  ;;  %v1988_v7 = vadd.f32 %v4841_v20, %v1605_v4  ;;  %v2079_v42 = vmax.f32 %v4986_v30, %v2078_v8 }
 0x183   : > { %v2122_v11 = vmax.f32 %v2120_v58, %v2121_v57  ;;  %v2359_v12 = vmax.f32 %v2357_v0, %v2358_v53  ;;  %v2362_v17 = vsel %vm2030_vm0, %v1989_v6, -inf  ;;  %v2125_v23 = vsel %vm2030_vm0, %v1883_v60, -inf }
 0x184   : > { %v2123_v13 = vsel %vm2030_vm0, %v1882_v5, -inf  ;;  %v3529_v16 = vpop.f32.mrb[46].mxu0  ;;  %v2360_v21 = vsel %vm2030_vm0, %v1988_v7, -inf  ;;  %v3688_v22 = vpop.f32.mrb[46].mxu1  ;;  %v2080_v8 = vrot.slane %v2079_v42, 2 }
 0x185   : > { %v2124_v25 = vmax.f32 %v2122_v11, %v2123_v13  ;;  %v1085_v26 = vpop.f32.mrb[47].mxu0  ;;  %v2361_v27 = vmax.f32 %v2359_v12, %v2360_v21  ;;  %v1615_v28 = vpop.f32.mrb[47].mxu1  ;;  %v1885_v34 = vadd.f32 %v3529_v16, %v4912_v36  ;;  %v1991_v38 = vadd.f32 %v3688_v22, %v4863_v40 }
 0x186   : > { %v1884_v37 = vadd.f32 %v4919_v48, %v1085_v26  ;;  %v1990_v41 = vadd.f32 %v4869_v44, %v1615_v28 }
 0x187   : > { %v2126_v43 = vmax.f32 %v2124_v25, %v2125_v23  ;;  %v2363_v49 = vmax.f32 %v2361_v27, %v2362_v17  ;;  %v2366_v54 = vsel %vm2030_vm0, %v1991_v38, -inf  ;;  %v2129_v30 = vsel %vm2030_vm0, %v1885_v34, -inf }
 0x188   : > { %v2127_v52 = vsel %vm2030_vm0, %v1884_v37, -inf  ;;  %v3532_v53 = vpop.f32.mrb[48].mxu0  ;;  %v2364_v56 = vsel %vm2030_vm0, %v1990_v41, -inf  ;;  %v3691_v57 = vpop.f32.mrb[48].mxu1  ;;  %v2081_v38 = vmax.f32 %v2079_v42, %v2080_v8 }
 0x189   : > { %v2128_v58 = vmax.f32 %v2126_v43, %v2127_v52  ;;  %v1887_v60 = vadd.f32 %v3532_v53, %v4756_v32  ;;  %v1095_v62 = vpop.f32.mrb[49].mxu0  ;;  %v2365_v0 = vmax.f32 %v2363_v49, %v2364_v56  ;;  %v1993_v4 = vadd.f32 %v3691_v57, %v4766_v35  ;;  %v1625_v5 = vpop.f32.mrb[49].mxu1 }
 0x18a   : > { %v1886_v6 = vadd.f32 %v4761_v33, %v1095_v62  ;;  %v1992_v7 = vadd.f32 %v4772_v39, %v1625_v5  ;;  %v2082_v5 = vrot.slane %v2081_v38, 1 }
 0x18b   : > { %v2130_v11 = vmax.f32 %v2128_v58, %v2129_v30  ;;  %v2138_v12 = vsel %vm2030_vm0, %v1887_v60, -inf  ;;  %v2367_v13 = vmax.f32 %v2365_v0, %v2366_v54  ;;  %v2370_v32 = vsel %vm2030_vm0, %v1993_v4, -inf }
 0x18c   : > { %v2137_v16 = vsel %vm2030_vm0, %v1886_v6, -inf  ;;  %v3535_v17 = vpop.f32.mrb[50].mxu0  ;;  %v2368_v21 = vsel %vm2030_vm0, %v1992_v7, -inf  ;;  %v3694_v35 = vpop.f32.mrb[50].mxu1 }
 0x18d   : > { %v2131_v22 = vrot.slane %v2130_v11, 4  ;;  %v2139_v23 = vmax.f32 %v2137_v16, %v2138_v12  ;;  %v1105_v25 = vpop.f32.mrb[51].mxu0  ;;  %v2369_v26 = vmax.f32 %v2367_v13, %v2368_v21  ;;  %v1635_v33 = vpop.f32.mrb[51].mxu1  ;;  %v1889_v27 = vadd.f32 %v3535_v17, %v4781_v45 }
 0x18e   : > { %v1888_v28 = vadd.f32 %v4786_v46, %v1105_v25  ;;  %v1995_v34 = vadd.f32 %v3694_v35, %v4793_v50  ;;  %v1994_v37 = vadd.f32 %v4799_v55, %v1635_v33  ;;  %v5124_v33 = vld [vmem:[%s5535_s3] ss:$0 sm:$0xff] }
 0x18f   : > { %v2132_v41 = vmax.f32 %v2130_v11, %v2131_v22  ;;  %v2371_v43 = vmax.f32 %v2369_v26, %v2370_v32  ;;  %v2142_v62 = vsel %vm2030_vm0, %v1889_v27, -inf  ;;  %v2083_v26 = vmax.f32 %v2081_v38, %v2082_v5 }
 0x190   : > { %v2140_v49 = vsel %vm2030_vm0, %v1888_v28, -inf  ;;  %v3538_v52 = vpop.f32.mrb[52].mxu0  ;;  %v2374_v53 = vsel %vm2030_vm0, %v1995_v34, -inf  ;;  %v2372_v54 = vsel %vm2030_vm0, %v1994_v37, -inf  ;;  %v3697_v56 = vpop.f32.mrb[52].mxu1 }
 0x191   : > { %v2133_v57 = vrot.slane %v2132_v41, 2  ;;  %v2141_v58 = vmax.f32 %v2139_v23, %v2140_v49  ;;  %v1891_v45 = vadd.f32 %v3538_v52, %v4807_v61  ;;  %v1115_v46 = vpop.f32.mrb[53].mxu0  ;;  %v2373_v60 = vmax.f32 %v2371_v43, %v2372_v54  ;;  %v1645_v50 = vpop.f32.mrb[53].mxu1 }
 0x192   : > { %v1890_v42 = vadd.f32 %v4813_v63, %v1115_v46  ;;  %v1997_v0 = vadd.f32 %v3697_v56, %v4820_v3  ;;  %v1996_v4 = vadd.f32 %v4827_v10, %v1645_v50 }
 0x193   : > { %v2134_v30 = vmax.f32 %v2132_v41, %v2133_v57  ;;  %v2143_v6 = vmax.f32 %v2141_v58, %v2142_v62  ;;  %v2375_v7 = vmax.f32 %v2373_v60, %v2374_v53  ;;  %v2146_v17 = vsel %vm2030_vm0, %v1891_v45, -inf }
 0x194   : > { %v2144_v8 = vsel %vm2030_vm0, %v1890_v42, -inf  ;;  %v3541_v11 = vpop.f32.mrb[54].mxu0  ;;  %v2378_v61 = vsel %vm2030_vm0, %v1997_v0, -inf  ;;  %v2376_v12 = vsel %vm2030_vm0, %v1996_v4, -inf  ;;  %v3700_v13 = vpop.f32.mrb[54].mxu1  ;;  %v2462_v60 = vadd.f32 %v5124_v33, %v2083_v26 }
 0x195   : > { %v2135_v16 = vrot.slane %v2134_v30, 1  ;;  %v2145_v63 = vmax.f32 %v2143_v6, %v2144_v8  ;;  %v1125_v32 = vpop.f32.mrb[55].mxu0  ;;  %v2377_v3 = vmax.f32 %v2375_v7, %v2376_v12  ;;  %v1655_v21 = vpop.f32.mrb[55].mxu1  ;;  %v1893_v35 = vadd.f32 %v3541_v11, %v4836_v19  ;;  %v5146_v12 = vld [vmem:[%s5534_s2 + $0x58] sm:$0xff] }
 0x196   : > { %v1892_v22 = vadd.f32 %v4841_v20, %v1125_v32  ;;  %v1999_v23 = vadd.f32 %v3700_v13, %v4848_v24  ;;  %v1998_v25 = vadd.f32 %v4855_v31, %v1655_v21 }
 0x197   : > { %v2136_v27 = vmax.f32 %v2134_v30, %v2135_v16  ;;  %v2147_v28 = vmax.f32 %v2145_v63, %v2146_v17  ;;  %v2379_v34 = vmax.f32 %v2377_v3, %v2378_v61  ;;  %v2150_v57 = vsel %vm2030_vm0, %v1893_v35, -inf }
 0x198   : > { %v2148_v37 = vsel %vm2030_vm0, %v1892_v22, -inf  ;;  %v3544_v41 = vpop.f32.mrb[56].mxu0  ;;  %v2382_v19 = vsel %vm2030_vm0, %v1999_v23, -inf  ;;  %v2380_v20 = vsel %vm2030_vm0, %v1998_v25, -inf  ;;  %v3703_v43 = vpop.f32.mrb[56].mxu1 }
 0x199   : > { %v2463_v49 = vadd.f32 %v5124_v33, %v2136_v27  ;;  %v2149_v38 = vmax.f32 %v2147_v28, %v2148_v37  ;;  %v1895_v52 = vadd.f32 %v3544_v41, %v4863_v40  ;;  %v1135_v53 = vpop.f32.mrb[57].mxu0  ;;  %v2381_v54 = vmax.f32 %v2379_v34, %v2380_v20  ;;  %v1665_v56 = vpop.f32.mrb[57].mxu1  ;;  %v5160_v41 = vld [vmem:[%s5534_s2 + $0x68] sm:$0xff] }
 0x19a   : > { %v1894_v58 = vadd.f32 %v4869_v44, %v1135_v53  ;;  %v2001_v45 = vadd.f32 %v3703_v43, %v4876_v51  ;;  %v2000_v46 = vadd.f32 %v4883_v59, %v1665_v56 }
 0x19b   : > { %v2491_v50 = vrot.slane %v2463_v49, 7  ;;  %v2151_v62 = vmax.f32 %v2149_v38, %v2150_v57  ;;  %v2383_v42 = vmax.f32 %v2381_v54, %v2382_v19  ;;  %v2154_v44 = vsel %vm2030_vm0, %v1895_v52, -inf }
 0x19c   : > { %v2152_v0 = vsel %vm2030_vm0, %v1894_v58, -inf  ;;  %v3547_v4 = vpop.f32.mrb[58].mxu0  ;;  %v2386_v40 = vsel %vm2030_vm0, %v2001_v45, -inf  ;;  %v2384_v5 = vsel %vm2030_vm0, %v2000_v46, -inf  ;;  %v3706_v30 = vpop.f32.mrb[58].mxu1 }
 0x19d   : > { %v5140_v6 = vsel %vm2492_vm2, %v2491_v50, %v2462_v60  ;;  %v2153_v7 = vmax.f32 %v2151_v62, %v2152_v0  ;;  %v1145_v8 = vpop.f32.mrb[59].mxu0  ;;  %v2385_v11 = vmax.f32 %v2383_v42, %v2384_v5  ;;  %v1675_v61 = vpop.f32.mrb[59].mxu1  ;;  %v1897_v13 = vadd.f32 %v5146_v12, %v3547_v4  ;;  %v5171_v60 = vld [vmem:[%s5534_s2 + $0x8] sm:$0xff]  ;;  %v5178_v42 = vld [vmem:[%s5534_s2 + $0x78] sm:$0xff] }
 0x19e   : > { %v1896_v16 = vadd.f32 %v4772_v39, %v1145_v8  ;;  %v2003_v17 = vadd.f32 %v3706_v30, %v4894_v9  ;;  %v2002_v63 = vadd.f32 %v4901_v18, %v1675_v61 }
 0x19f   : > { %v2155_v32 = vmax.f32 %v2153_v7, %v2154_v44  ;;  %v2387_v3 = vmax.f32 %v2385_v11, %v2386_v40  ;;  %v2158_v37 = vsel %vm2030_vm0, %v1897_v13, -inf  ;;  %v5185_v40 = vld [vmem:[%s5534_s2] sm:$0xff] }
 0x1a0   : > { %v2156_v21 = vsel %vm2030_vm0, %v1896_v16, -inf  ;;  %v3550_v35 = vpop.f32.mrb[60].mxu0  ;;  %v2390_v22 = vsel %vm2030_vm0, %v2003_v17, -inf  ;;  %v2388_v23 = vsel %vm2030_vm0, %v2002_v63, -inf  ;;  %v3709_v25 = vpop.f32.mrb[60].mxu1 }
 0x1a1   : > { %v2157_v26 = vmax.f32 %v2155_v32, %v2156_v21  ;;  %v1155_v27 = vpop.f32.mrb[61].mxu0  ;;  %v2389_v28 = vmax.f32 %v2387_v3, %v2388_v23  ;;  %v2005_v34 = vadd.f32 %v3709_v25, %v4912_v36  ;;  %v1685_v39 = vpop.f32.mrb[61].mxu1  ;;  %v1899_v19 = vadd.f32 %v5160_v41, %v3550_v35  ;;  %v5199_v35 = vld [vmem:[%s5534_s2 + $0x18] sm:$0xff]  ;;  %v5205_v23 = vld [vmem:[%s5534_s2 + $0x10] sm:$0xff] }
 0x1a2   : > { %v1898_v20 = vadd.f32 %v4799_v55, %v1155_v27  ;;  %v2004_v43 = vadd.f32 %v4919_v48, %v1685_v39 }
 0x1a3   : > { %v2159_v49 = vmax.f32 %v2157_v26, %v2158_v37  ;;  %v2391_v38 = vmax.f32 %v2389_v28, %v2390_v22  ;;  %v2394_v54 = vsel %vm2030_vm0, %v2005_v34, -inf  ;;  %v2162_v62 = vsel %vm2030_vm0, %v1899_v19, -inf }
 0x1a4   : > { %v2160_v52 = vsel %vm2030_vm0, %v1898_v20, -inf  ;;  %v3553_v53 = vpop.f32.mrb[62].mxu0  ;;  %v2392_v56 = vsel %vm2030_vm0, %v2004_v43, -inf  ;;  %v3712_v57 = vpop.f32.mrb[62].mxu1 }
 0x1a5   : > { %v2161_v58 = vmax.f32 %v2159_v49, %v2160_v52  ;;  %v1165_v45 = vpop.f32.mrb[63].mxu0  ;;  %v2393_v46 = vmax.f32 %v2391_v38, %v2392_v56  ;;  %v2007_v55 = vadd.f32 %v5171_v60, %v3712_v57  ;;  %v1695_v50 = vpop.f32.mrb[63].mxu1  ;;  %v1901_v0 = vadd.f32 %v5178_v42, %v3553_v53  ;;  %v5217_v52 = vld [vmem:[%s5534_s2 + $0x28] sm:$0xff] }
 0x1a6   : > { %v1900_v4 = vadd.f32 %v4827_v10, %v1165_v45  ;;  %v2006_v5 = vadd.f32 %v5185_v40, %v1695_v50 }
 0x1a7   : > { %v2163_v30 = vmax.f32 %v2161_v58, %v2162_v62  ;;  %v5188_v44 = vmax.f32 %v2393_v46, %v2394_v54  ;;  %v2403_v7 = vsel %vm2030_vm0, %v2007_v55, -inf  ;;  %v2166_v3 = vsel %vm2030_vm0, %v1901_v0, -inf  ;;  %v5223_v54 = vld [vmem:[%s5534_s2 + $0x20] sm:$0xff] }
 0x1a8   : > { %v2164_v8 = vsel %vm2030_vm0, %v1900_v4, -inf  ;;  %v3556_v11 = vpop.f32.mrb[64].mxu0  ;;  %v2402_v61 = vsel %vm2030_vm0, %v2006_v5, -inf  ;;  %v3715_v13 = vpop.f32.mrb[64].mxu1 }
 0x1a9   : > { %v2165_v16 = vmax.f32 %v2163_v30, %v2164_v8  ;;  %v1903_v10 = vadd.f32 %v3556_v11, %v4848_v24  ;;  %v1175_v17 = vpop.f32.mrb[65].mxu0  ;;  %v2404_v63 = vmax.f32 %v2402_v61, %v2403_v7  ;;  %v1705_v32 = vpop.f32.mrb[65].mxu1  ;;  %v2009_v22 = vadd.f32 %v5199_v35, %v3715_v13  ;;  %v5235_v8 = vld [vmem:[%s5534_s2 + $0x38] sm:$0xff]  ;;  %v5241_v61 = vld [vmem:[%s5534_s2 + $0x30] sm:$0xff] }
 0x1aa   : > { %v1902_v21 = vadd.f32 %v4855_v31, %v1175_v17  ;;  %v2008_v24 = vadd.f32 %v5205_v23, %v1705_v32 }
 0x1ab   : > { %v2167_v25 = vmax.f32 %v2165_v16, %v2166_v3  ;;  %v2407_v31 = vsel %vm2030_vm0, %v2009_v22, -inf  ;;  %v2170_v39 = vsel %vm2030_vm0, %v1903_v10, -inf }
 0x1ac   : > { %v2168_v26 = vsel %vm2030_vm0, %v1902_v21, -inf  ;;  %v3559_v27 = vpop.f32.mrb[66].mxu0  ;;  %v2405_v28 = vsel %vm2030_vm0, %v2008_v24, -inf  ;;  %v3718_v34 = vpop.f32.mrb[66].mxu1 }
 0x1ad   : > { %v2169_v37 = vmax.f32 %v2167_v25, %v2168_v26  ;;  %v1185_v19 = vpop.f32.mrb[67].mxu0  ;;  %v2406_v20 = vmax.f32 %v2404_v63, %v2405_v28  ;;  %v1715_v43 = vpop.f32.mrb[67].mxu1  ;;  %v1905_v49 = vadd.f32 %v3559_v27, %v4876_v51  ;;  %v2011_v53 = vadd.f32 %v5217_v52, %v3718_v34  ;;  %v5259_v34 = vld [vmem:[%s5534_s2 + $0x40] sm:$0xff] }
 0x1ae   : > { %v1904_v38 = vadd.f32 %v4883_v59, %v1185_v19  ;;  %v2010_v56 = vadd.f32 %v5223_v54, %v1715_v43 }
 0x1af   : > { %v2171_v57 = vmax.f32 %v2169_v37, %v2170_v39  ;;  %v2408_v58 = vmax.f32 %v2406_v20, %v2407_v31  ;;  %v2411_v59 = vsel %vm2030_vm0, %v2011_v53, -inf  ;;  %v2174_v30 = vsel %vm2030_vm0, %v1905_v49, -inf  ;;  %v5253_v31 = vld [vmem:[%s5534_s2 + $0x48] sm:$0xff] }
 0x1b0   : > { %v2172_v51 = vsel %vm2030_vm0, %v1904_v38, -inf  ;;  %v3562_v45 = vpop.f32.mrb[68].mxu0  ;;  %v2409_v46 = vsel %vm2030_vm0, %v2010_v56, -inf  ;;  %v3721_v55 = vpop.f32.mrb[68].mxu1 }
 0x1b1   : > { %v2173_v50 = vmax.f32 %v2171_v57, %v2172_v51  ;;  %v1907_v62 = vadd.f32 %v3562_v45, %v4894_v9  ;;  %v1195_v0 = vpop.f32.mrb[69].mxu0  ;;  %v2410_v4 = vmax.f32 %v2408_v58, %v2409_v46  ;;  %v1725_v5 = vpop.f32.mrb[69].mxu1  ;;  %v2013_v11 = vadd.f32 %v5235_v8, %v3721_v55  ;;  %v5272_v46 = vld [vmem:[%s5534_s2 + $0x50] sm:$0xff] }
 0x1b2   : > { %v1906_v7 = vadd.f32 %v4901_v18, %v1195_v0  ;;  %v2012_v9 = vadd.f32 %v5241_v61, %v1725_v5 }
 0x1b3   : > { %v2175_v13 = vmax.f32 %v2173_v50, %v2174_v30  ;;  %v2412_v16 = vmax.f32 %v2410_v4, %v2411_v59  ;;  %v2415_v18 = vsel %vm2030_vm0, %v2013_v11, -inf  ;;  %v2178_v3 = vsel %vm2030_vm0, %v1907_v62, -inf }
 0x1b4   : > { %v2176_v10 = vsel %vm2030_vm0, %v1906_v7, -inf  ;;  %v3565_v17 = vpop.f32.mrb[70].mxu0  ;;  %v2413_v63 = vsel %vm2030_vm0, %v2012_v9, -inf  ;;  %v3724_v32 = vpop.f32.mrb[70].mxu1 }
 0x1b5   : > { %v2177_v21 = vmax.f32 %v2175_v13, %v2176_v10  ;;  %v1205_v22 = vpop.f32.mrb[71].mxu0  ;;  %v2414_v24 = vmax.f32 %v2412_v16, %v2413_v63  ;;  %v1735_v25 = vpop.f32.mrb[71].mxu1  ;;  %v1909_v26 = vadd.f32 %v3565_v17, %v4912_v36  ;;  %v2015_v28 = vadd.f32 %v5253_v31, %v3724_v32 }
 0x1b6   : > { %v1908_v27 = vadd.f32 %v4919_v48, %v1205_v22  ;;  %v2014_v39 = vadd.f32 %v5259_v34, %v1735_v25 }
 0x1b7   : > { %v2179_v37 = vmax.f32 %v2177_v21, %v2178_v3  ;;  %v2416_v19 = vmax.f32 %v2414_v24, %v2415_v18  ;;  %v2419_v48 = vsel %vm2030_vm0, %v2015_v28, -inf  ;;  %v2182_v45 = vsel %vm2030_vm0, %v1909_v26, -inf  ;;  %v5285_v3 = vld [vmem:[%s5534_s2 + $0x60] sm:$0xff] }
 0x1b8   : > { %v2180_v36 = vsel %vm2030_vm0, %v1908_v27, -inf  ;;  %v3568_v20 = vpop.f32.mrb[72].mxu0  ;;  %v2417_v43 = vsel %vm2030_vm0, %v2014_v39, -inf  ;;  %v3727_v49 = vpop.f32.mrb[72].mxu1 }
 0x1b9   : > { %v2181_v38 = vmax.f32 %v2179_v37, %v2180_v36  ;;  %v1911_v53 = vadd.f32 %v5171_v60, %v3568_v20  ;;  %v1215_v56 = vpop.f32.mrb[73].mxu0  ;;  %v2418_v57 = vmax.f32 %v2416_v19, %v2417_v43  ;;  %v2017_v58 = vadd.f32 %v5146_v12, %v3727_v49  ;;  %v1745_v51 = vpop.f32.mrb[73].mxu1 }
 0x1ba   : > { %v1910_v59 = vadd.f32 %v5185_v40, %v1215_v56  ;;  %v2016_v55 = vadd.f32 %v5272_v46, %v1745_v51  ;;  %v5298_v56 = vld [vmem:[%s5534_s2 + $0x70] sm:$0xff] }
 0x1bb   : > { %v2183_v50 = vmax.f32 %v2181_v38, %v2182_v45  ;;  %v2191_v62 = vsel %vm2030_vm0, %v1911_v53, -inf  ;;  %v2420_v0 = vmax.f32 %v2418_v57, %v2419_v48  ;;  %v2423_v30 = vsel %vm2030_vm0, %v2017_v58, -inf }
 0x1bc   : > { %v2190_v4 = vsel %vm2030_vm0, %v1910_v59, -inf  ;;  %v3571_v5 = vpop.f32.mrb[74].mxu0  ;;  %v2421_v7 = vsel %vm2030_vm0, %v2016_v55, -inf  ;;  %v3730_v11 = vpop.f32.mrb[74].mxu1 }
 0x1bd   : > { %v2184_v9 = vrot.slane %v2183_v50, 4  ;;  %v2192_v13 = vmax.f32 %v2190_v4, %v2191_v62  ;;  %v1225_v16 = vpop.f32.mrb[75].mxu0  ;;  %v2422_v10 = vmax.f32 %v2420_v0, %v2421_v7  ;;  %v1755_v17 = vpop.f32.mrb[75].mxu1  ;;  %v1913_v18 = vadd.f32 %v5199_v35, %v3571_v5 }
 0x1be   : > { %v1912_v63 = vadd.f32 %v5205_v23, %v1225_v16  ;;  %v2019_v32 = vadd.f32 %v5160_v41, %v3730_v11  ;;  %v2018_v21 = vadd.f32 %v5285_v3, %v1755_v17 }
 0x1bf   : > { %v2185_v22 = vmax.f32 %v2183_v50, %v2184_v9  ;;  %v2424_v24 = vmax.f32 %v2422_v10, %v2423_v30  ;;  %v2195_v49 = vsel %vm2030_vm0, %v1913_v18, -inf  ;;  %v5310_v10 = vld [vmem:[%s5534_s2 + $0x88] sm:$0xff]  ;;  %v5316_v18 = vld [vmem:[%s5534_s2 + $0x80] sm:$0xff] }
 0x1c0   : > { %v2193_v25 = vsel %vm2030_vm0, %v1912_v63, -inf  ;;  %v3574_v26 = vpop.f32.mrb[76].mxu0  ;;  %v2427_v27 = vsel %vm2030_vm0, %v2019_v32, -inf  ;;  %v2425_v28 = vsel %vm2030_vm0, %v2018_v21, -inf  ;;  %v3733_v39 = vpop.f32.mrb[76].mxu1 }
 0x1c1   : > { %v2186_v37 = vrot.slane %v2185_v22, 2  ;;  %v2194_v19 = vmax.f32 %v2192_v13, %v2193_v25  ;;  %v1915_v36 = vadd.f32 %v5217_v52, %v3574_v26  ;;  %v1235_v20 = vpop.f32.mrb[77].mxu0  ;;  %v2426_v48 = vmax.f32 %v2424_v24, %v2425_v28  ;;  %v1765_v43 = vpop.f32.mrb[77].mxu1 }
 0x1c2   : > { %v1914_v38 = vadd.f32 %v5223_v54, %v1235_v20  ;;  %v2021_v53 = vadd.f32 %v5178_v42, %v3733_v39  ;;  %v2020_v57 = vadd.f32 %v5298_v56, %v1765_v43 }
 0x1c3   : > { %v2187_v58 = vmax.f32 %v2185_v22, %v2186_v37  ;;  %v2196_v51 = vmax.f32 %v2194_v19, %v2195_v49  ;;  %v2428_v45 = vmax.f32 %v2426_v48, %v2427_v27  ;;  %v2199_v5 = vsel %vm2030_vm0, %v1915_v36, -inf }
 0x1c4   : > { %v2197_v59 = vsel %vm2030_vm0, %v1914_v38, -inf  ;;  %v3577_v55 = vpop.f32.mrb[78].mxu0  ;;  %v2431_v50 = vsel %vm2030_vm0, %v2021_v53, -inf  ;;  %v2429_v62 = vsel %vm2030_vm0, %v2020_v57, -inf  ;;  %v3736_v0 = vpop.f32.mrb[78].mxu1  ;;  %v5329_v38 = vld [vmem:[%s5534_s2 + $0x98] sm:$0xff] }
 0x1c5   : > { %v2188_v4 = vrot.slane %v2187_v58, 1  ;;  %v2198_v30 = vmax.f32 %v2196_v51, %v2197_v59  ;;  %v1245_v7 = vpop.f32.mrb[79].mxu0  ;;  %v2430_v11 = vmax.f32 %v2428_v45, %v2429_v62  ;;  %v1775_v9 = vpop.f32.mrb[79].mxu1  ;;  %v1917_v13 = vadd.f32 %v5235_v8, %v3577_v55  ;;  %v5335_v57 = vld [vmem:[%s5534_s2 + $0x90] sm:$0xff] }
 0x1c6   : > { %v1916_v16 = vadd.f32 %v5241_v61, %v1245_v7  ;;  %v2023_v17 = vadd.f32 %v5310_v10, %v3736_v0  ;;  %v2022_v63 = vadd.f32 %v5316_v18, %v1775_v9 }
 0x1c7   : > { %v2189_v32 = vmax.f32 %v2187_v58, %v2188_v4  ;;  %v2200_v21 = vmax.f32 %v2198_v30, %v2199_v5  ;;  %v2432_v22 = vmax.f32 %v2430_v11, %v2431_v50  ;;  %v2203_v43 = vsel %vm2030_vm0, %v1917_v13, -inf }
 0x1c8   : > { %v2201_v24 = vsel %vm2030_vm0, %v1916_v16, -inf  ;;  %v3580_v25 = vpop.f32.mrb[80].mxu0  ;;  %v2435_v26 = vsel %vm2030_vm0, %v2023_v17, -inf  ;;  %v2433_v27 = vsel %vm2030_vm0, %v2022_v63, -inf  ;;  %v3739_v28 = vpop.f32.mrb[80].mxu1  ;;  %v3943_v63 = vld [vmem:[%s5534_s2 + $0xa8] sm:$0xff] }
 0x1c9   : > { %v2464_v39 = vadd.f32 %v5124_v33, %v2189_v32  ;;  %v2202_v37 = vmax.f32 %v2200_v21, %v2201_v24  ;;  %v1919_v19 = vadd.f32 %v5253_v31, %v3580_v25  ;;  %v1255_v36 = vpop.f32.mrb[81].mxu0  ;;  %v2434_v20 = vmax.f32 %v2432_v22, %v2433_v27  ;;  %v1785_v48 = vpop.f32.mrb[81].mxu1 }
 0x1ca   : > { %v1918_v49 = vadd.f32 %v5259_v34, %v1255_v36  ;;  %v2025_v53 = vadd.f32 %v5329_v38, %v3739_v28  ;;  %v2024_v58 = vadd.f32 %v5335_v57, %v1785_v48 }
 0x1cb   : > { %v2494_v51 = vrot.slane %v2464_v39, 6  ;;  %v2204_v45 = vmax.f32 %v2202_v37, %v2203_v43  ;;  %v2436_v59 = vmax.f32 %v2434_v20, %v2435_v26  ;;  %v2207_v30 = vsel %vm2030_vm0, %v1919_v19, -inf  ;;  %v3945_v19 = vld [vmem:[%s5534_s2 + $0xb8] sm:$0xff] }
 0x1cc   : > { %v2205_v55 = vsel %vm2030_vm0, %v1918_v49, -inf  ;;  %v3583_v50 = vpop.f32.mrb[82].mxu0  ;;  %v2439_v62 = vsel %vm2030_vm0, %v2025_v53, -inf  ;;  %v2437_v0 = vsel %vm2030_vm0, %v2024_v58, -inf  ;;  %v3742_v4 = vpop.f32.mrb[82].mxu1  ;;  %v3946_v53 = vld [vmem:[%s5534_s2 + $0xb0] sm:$0xff] }
 0x1cd   : > { %v5343_v5 = vsel %vm2495_vm3, %v2494_v51, %v5140_v6  ;;  %v2206_v7 = vmax.f32 %v2204_v45, %v2205_v55  ;;  %v1265_v11 = vpop.f32.mrb[83].mxu0  ;;  %v2438_v9 = vmax.f32 %v2436_v59, %v2437_v0  ;;  %v1795_v13 = vpop.f32.mrb[83].mxu1  ;;  %v1921_v16 = vadd.f32 %v5146_v12, %v3583_v50  ;;  %v3944_v6 = vld [vmem:[%s5534_s2 + $0xa0] sm:$0xff] }
 0x1ce   : > { %v1920_v17 = vadd.f32 %v5272_v46, %v1265_v11  ;;  %v2027_v32 = vadd.f32 %v3943_v63, %v3742_v4  ;;  %v2026_v21 = vadd.f32 %v3944_v6, %v1795_v13 }
 0x1cf   : > { %v2208_v22 = vmax.f32 %v2206_v7, %v2207_v30  ;;  %v2440_v24 = vmax.f32 %v2438_v9, %v2439_v62  ;;  %v2211_v48 = vsel %vm2030_vm0, %v1921_v16, -inf }
 0x1d0   : > { %v2209_v25 = vsel %vm2030_vm0, %v1920_v17, -inf  ;;  %v3586_v26 = vpop.f32.mrb[84].mxu0  ;;  %v2443_v27 = vsel %vm2030_vm0, %v2027_v32, -inf  ;;  %v2441_v12 = vsel %vm2030_vm0, %v2026_v21, -inf  ;;  %v3745_v46 = vpop.f32.mrb[84].mxu1 }
 0x1d1   : > { %v2210_v28 = vmax.f32 %v2208_v22, %v2209_v25  ;;  %v1275_v39 = vpop.f32.mrb[85].mxu0  ;;  %v2442_v37 = vmax.f32 %v2440_v24, %v2441_v12  ;;  %v2029_v36 = vadd.f32 %v3945_v19, %v3745_v46  ;;  %v1805_v20 = vpop.f32.mrb[85].mxu1  ;;  %v1923_v43 = vadd.f32 %v5160_v41, %v3586_v26 }
 0x1d2   : > { %v1922_v49 = vadd.f32 %v5285_v3, %v1275_v39  ;;  %v2028_v58 = vadd.f32 %v3946_v53, %v1805_v20 }
 0x1d3   : > { %v2212_v51 = vmax.f32 %v2210_v28, %v2211_v48  ;;  %v2444_v45 = vmax.f32 %v2442_v37, %v2443_v27  ;;  %v2447_v50 = vsel %vm2030_vm0, %v2029_v36, -inf  ;;  %v2215_v41 = vsel %vm2030_vm0, %v1923_v43, -inf }
 0x1d4   : > { %v2213_v59 = vsel %vm2030_vm0, %v1922_v49, -inf  ;;  %v3589_v55 = vpop.f32.mrb[86].mxu0  ;;  %v2445_v62 = vsel %vm2030_vm0, %v2028_v58, -inf }
 0x1d5   : > { %v2214_v0 = vmax.f32 %v2212_v51, %v2213_v59  ;;  %v1285_v4 = vpop.f32.mrb[87].mxu0  ;;  %v2446_v30 = vmax.f32 %v2444_v45, %v2445_v62  ;;  %v1925_v3 = vadd.f32 %v5178_v42, %v3589_v55 }
 0x1d6   : > { %v1924_v7 = vadd.f32 %v5298_v56, %v1285_v4 }
 0x1d7   : > { %v2216_v11 = vmax.f32 %v2214_v0, %v2215_v41  ;;  %v5372_v9 = vmax.f32 %v2446_v30, %v2447_v50  ;;  %v2219_v21 = vsel %vm2030_vm0, %v1925_v3, -inf }
 0x1d8   : > { %v2217_v13 = vsel %vm2030_vm0, %v1924_v7, -inf  ;;  %v3592_v16 = vpop.f32.mrb[88].mxu0 }
 0x1d9   : > { %v2218_v17 = vmax.f32 %v2216_v11, %v2217_v13  ;;  %v1295_v32 = vpop.f32.mrb[89].mxu0  ;;  %v1927_v22 = vadd.f32 %v5310_v10, %v3592_v16 }
 0x1da   : > { %v1926_v24 = vadd.f32 %v5316_v18, %v1295_v32 }
 0x1db   : > { %v2220_v25 = vmax.f32 %v2218_v17, %v2219_v21  ;;  %v2223_v12 = vsel %vm2030_vm0, %v1927_v22, -inf }
 0x1dc   : > { %v2221_v26 = vsel %vm2030_vm0, %v1926_v24, -inf  ;;  %v3595_v42 = vpop.f32.mrb[90].mxu0 }
 0x1dd   : > { %v2222_v27 = vmax.f32 %v2220_v25, %v2221_v26  ;;  %v1305_v56 = vpop.f32.mrb[91].mxu0  ;;  %v1929_v46 = vadd.f32 %v5329_v38, %v3595_v42 }
 0x1de   : > { %v1928_v28 = vadd.f32 %v5335_v57, %v1305_v56 }
 0x1df   : > { %v2224_v39 = vmax.f32 %v2222_v27, %v2223_v12  ;;  %v2227_v18 = vsel %vm2030_vm0, %v1929_v46, -inf }
 0x1e0   : > { %v2225_v37 = vsel %vm2030_vm0, %v1928_v28, -inf  ;;  %v3598_v36 = vpop.f32.mrb[92].mxu0 }
 0x1e1   : > { %v2226_v20 = vmax.f32 %v2224_v39, %v2225_v37  ;;  %v1315_v10 = vpop.f32.mrb[93].mxu0  ;;  %v1931_v48 = vadd.f32 %v3943_v63, %v3598_v36 }
 0x1e2   : > { %v1930_v43 = vadd.f32 %v3944_v6, %v1315_v10 }
 0x1e3   : > { %v2228_v49 = vmax.f32 %v2226_v20, %v2227_v18  ;;  %v2231_v38 = vsel %vm2030_vm0, %v1931_v48, -inf }
 0x1e4   : > { %v2229_v58 = vsel %vm2030_vm0, %v1930_v43, -inf  ;;  %v3601_v51 = vpop.f32.mrb[94].mxu0 }
 0x1e5   : > { %v2230_v45 = vmax.f32 %v2228_v49, %v2229_v58  ;;  %v1325_v59 = vpop.f32.mrb[95].mxu0  ;;  %v1933_v55 = vadd.f32 %v3945_v19, %v3601_v51  ;;  %v2449_v49 = vrot.slane %v5372_v9, 4 }
 0x1e6   : > { %v1932_v57 = vadd.f32 %v3946_v53, %v1325_v59 }
 0x1e7   : > { %v2232_v50 = vmax.f32 %v2230_v45, %v2231_v38  ;;  %v2235_v63 = vsel %vm2030_vm0, %v1933_v55, -inf }
 0x1e8   : > { %v2233_v62 = vsel %vm2030_vm0, %v1932_v57, -inf  ;;  %v3604_v0 = vpop.f32.mrb[96].mxu0 }
 0x1e9   : > { %v2234_v4 = vmax.f32 %v2232_v50, %v2233_v62  ;;  %v1935_v30 = vadd.f32 %v5171_v60, %v3604_v0  ;;  %v1335_v41 = vpop.f32.mrb[97].mxu0  ;;  %v2450_v0 = vmax.f32 %v5372_v9, %v2449_v49 }
 0x1ea   : > { %v1934_v6 = vadd.f32 %v5185_v40, %v1335_v41 }
 0x1eb   : > { %v2236_v3 = vmax.f32 %v2234_v4, %v2235_v63  ;;  %v2244_v7 = vsel %vm2030_vm0, %v1935_v30, -inf }
 0x1ec   : > { %v2243_v11 = vsel %vm2030_vm0, %v1934_v6, -inf  ;;  %v3607_v13 = vpop.f32.mrb[98].mxu0 }
 0x1ed   : > { %v2237_v19 = vrot.slane %v2236_v3, 4  ;;  %v2245_v53 = vmax.f32 %v2243_v11, %v2244_v7  ;;  %v1345_v16 = vpop.f32.mrb[99].mxu0  ;;  %v1937_v17 = vadd.f32 %v5199_v35, %v3607_v13 }
 0x1ee   : > { %v1936_v32 = vadd.f32 %v5205_v23, %v1345_v16  ;;  %v2343_v23 = vrot.slane %v5044_v47, 4 }
 0x1ef   : > { %v2238_v21 = vmax.f32 %v2236_v3, %v2237_v19  ;;  %v2248_v26 = vsel %vm2030_vm0, %v1937_v17, -inf }
 0x1f0   : > { %v2246_v60 = vsel %vm2030_vm0, %v1936_v32, -inf  ;;  %v3610_v22 = vpop.f32.mrb[100].mxu0  ;;  %v2344_v58 = vmax.f32 %v5044_v47, %v2343_v23  ;;  %v2675_v23 = vld [vmem:[%s5542_s10] sm:$0xff] }
 0x1f1   : > { %v2239_v24 = vrot.slane %v2238_v21, 2  ;;  %v2247_v25 = vmax.f32 %v2245_v53, %v2246_v60  ;;  %v1355_v40 = vpop.f32.mrb[101].mxu0  ;;  %v1939_v42 = vadd.f32 %v5217_v52, %v3610_v22  ;;  %v2396_v52 = vrot.slane %v5188_v44, 4 }
 0x1f2   : > { %v1938_v27 = vadd.f32 %v5223_v54, %v1355_v40  ;;  %v2345_v30 = vrot.slane %v2344_v58, 2  ;;  %v2588_v40 = vld [vmem:[%s5539_s7] sm:$0xff] }
 0x1f3   : > { %v2240_v56 = vmax.f32 %v2238_v21, %v2239_v24  ;;  %v2249_v12 = vmax.f32 %v2247_v25, %v2248_v26  ;;  %v2252_v36 = vsel %vm2030_vm0, %v1939_v42, -inf  ;;  %v2397_v55 = vmax.f32 %v5188_v44, %v2396_v52  ;;  %v2589_v26 = vld [vmem:[%s5539_s7 + $0x8] sm:$0xff]  ;;  %v2766_v52 = vld [vmem:[%s5545_s13] sm:$0xff] }
 0x1f4   : > { %v2250_v46 = vsel %vm2030_vm0, %v1938_v27, -inf  ;;  %v3613_v35 = vpop.f32.mrb[102].mxu0  ;;  %v2346_v44 = vmax.f32 %v2344_v58, %v2345_v30 }
 0x1f5   : > { %v2241_v28 = vrot.slane %v2240_v56, 1  ;;  %v2251_v39 = vmax.f32 %v2249_v12, %v2250_v46  ;;  %v1365_v37 = vpop.f32.mrb[103].mxu0  ;;  %v1941_v20 = vadd.f32 %v5235_v8, %v3613_v35  ;;  %v2398_v63 = vrot.slane %v2397_v55, 2 }
 0x1f6   : > { %v1940_v10 = vadd.f32 %v5241_v61, %v1365_v37  ;;  %v2347_v19 = vrot.slane %v2346_v44, 1  ;;  %v3852_v35 = vpack.c.bf16 %v2589_v26, %v2588_v40  ;;  %v2587_v37 = vld [vmem:[%s5538_s6] sm:$0xff] }
 0x1f7   : > { %v2242_v18 = vmax.f32 %v2240_v56, %v2241_v28  ;;  %v2253_v54 = vmax.f32 %v2251_v39, %v2252_v36  ;;  %v2256_v38 = vsel %vm2030_vm0, %v1941_v20, -inf  ;;  %v2399_v3 = vmax.f32 %v2397_v55, %v2398_v63  ;;  %v2676_v28 = vld [vmem:[%s5542_s10 + $0x8] sm:$0xff]  ;;  %v2677_v20 = vld [vmem:[%s5542_s10 + $0x10] sm:$0xff] }
 0x1f8   : > { %v2254_v48 = vsel %vm2030_vm0, %v1940_v10, -inf  ;;  %v3616_v43 = vpop.f32.mrb[104].mxu0  ;;  %v2348_v17 = vmax.f32 %v2346_v44, %v2347_v19  ;;  %v3855_v36 = vpack.c.bf16 %v2676_v28, %v2675_v23  ;;  %v2674_v10 = vld [vmem:[%s5541_s9] sm:$0xff] }
 0x1f9   : > { %v2465_v51 = vadd.f32 %v5124_v33, %v2242_v18  ;;  %v2255_v45 = vmax.f32 %v2253_v54, %v2254_v48  ;;  %v1375_v59 = vpop.f32.mrb[105].mxu0  ;;  %v1943_v8 = vadd.f32 %v5253_v31, %v3616_v43  ;;  %v2451_v31 = vrot.slane %v2450_v0, 2  ;;  %v2767_v18 = vld [vmem:[%s5545_s13 + $0x8] sm:$0xff]  ;;  %v2768_v48 = vld [vmem:[%s5545_s13 + $0x10] sm:$0xff]  ;;  %v2769_v43 = vld [vmem:[%s5545_s13 + $0x18] sm:$0xff] }
 0x1fa   : > { %v1942_v61 = vadd.f32 %v5259_v34, %v1375_v59  ;;  %v2400_v9 = vrot.slane %v2399_v3, 1  ;;  %v2467_v24 = vadd.f32 %v5124_v33, %v2348_v17  ;;  %v3858_v54 = vpack.c.bf16 %v2767_v18, %v2766_v52 }
 0x1fb   : > { %v2497_v57 = vrot.slane %v2465_v51, 5  ;;  %v2257_v50 = vmax.f32 %v2255_v45, %v2256_v38  ;;  %v2260_v41 = vsel %vm2030_vm0, %v1943_v8, -inf  ;;  %v2452_v11 = vmax.f32 %v2450_v0, %v2451_v31  ;;  %v3175_v45 = vld [vmem:[%s5540_s8] ss:$0 sm:$0xff]  ;;  %v2763_v8 = vld [vmem:[%s5544_s12 + $0x8] sm:$0xff]  ;;  %v2764_v0 = vld [vmem:[%s5544_s12 + $0x10] sm:$0xff] }
 0x1fc   : > { %v2258_v62 = vsel %vm2030_vm0, %v1942_v61, -inf  ;;  %v2401_v32 = vmax.f32 %v2399_v3, %v2400_v9  ;;  %v2503_v42 = vrot.slane %v2467_v24, 3  ;;  %v3861_v49 = vpack.c.bf16 %v2769_v43, %v2768_v48  ;;  %v2762_v38 = vld [vmem:[%s5544_s12] sm:$0xff] }
 0x1fd   : > { %v2259_v47 = vmax.f32 %v2257_v50, %v2258_v62  ;;  %v2499_v4 = vsel %vm2498_vm4, %v2497_v57, %v5343_v5  ;;  %v2453_v16 = vrot.slane %v2452_v11, 1  ;;  %v3173_v57 = vld [vmem:[%s5537_s5] ss:$0 sm:$0xff]  ;;  %v3864_v62 = vpack.c.bf16 %v2763_v8, %v2762_v38 }
 0x1fe   : > { %v2468_v1 = vadd.f32 %v5124_v33, %v2401_v32  ;;  %v2917_v31 = vld [vmem:[%s5546_s14] sm:$0xff] }
 0x1ff   : > { %v2261_v6 = vmax.f32 %v2259_v47, %v2260_v41  ;;  %v2454_v60 = vmax.f32 %v2452_v11, %v2453_v16  ;;  %v2765_v47 = vld [vmem:[%s5544_s12 + $0x18] sm:$0xff]  ;;  %v3177_v3 = vld [vmem:[%s5543_s11] ss:$0 sm:$0xff]  ;;  %v2919_v11 = vld [vmem:[%s5546_s14 + $0x10] sm:$0xff] }
 0x200   : > { %v2506_v27 = vrot.slane %v2468_v1, 2  ;;  %v3867_v63 = vpack.c.bf16 %v2765_v47, %v2764_v0  ;;  %v3182_v1 = vld [vmem:[%s5547_s15] ss:$0 sm:$0xff] }
 0x201   : > { %v2289_v34 = vmax.f32 %v2287_v14, %v2261_v6  ;;  %v2469_v14 = vadd.f32 %v5124_v33, %v2454_v60 }
 0x203   : > { %v2290_v7 = vrot.slane %v2289_v34, 4  ;;  %v2509_v46 = vrot.slane %v2469_v14, 1 }
 0x205   : > { %v2291_v13 = vmax.f32 %v2289_v34, %v2290_v7  ;;  %v2918_v34 = vld [vmem:[%s5546_s14 + $0x8] sm:$0xff] }
 0x206   : > { %v3870_v7 = vpack.c.bf16 %v2918_v34, %v2917_v31 }
 0x207   : > { %v2292_v53 = vrot.slane %v2291_v13, 2 }
 0x209   : > { %v2293_v5 = vmax.f32 %v2291_v13, %v2292_v53  ;;  %v2920_v13 = vld [vmem:[%s5546_s14 + $0x18] sm:$0xff] }
 0x20a   : > { %v3873_v53 = vpack.c.bf16 %v2920_v13, %v2919_v11 }
 0x20b   : > { %v2294_v21 = vrot.slane %v2293_v5, 1 }
 0x20d   : > { %v2295_v22 = vmax.f32 %v2293_v5, %v2294_v21 }
 0x20f   : > { %v2466_v2 = vadd.f32 %v5124_v33, %v2295_v22 }
 0x211   : > { %v2500_v25 = vrot.slane %v2466_v2, 4 }
 0x213   : > { %v2502_v56 = vsel %vm2501_vm5, %v2500_v25, %v2499_v4 }
 0x214   : > { %v2505_v12 = vsel %vm2504_vm6, %v2503_v42, %v2502_v56 }
 0x215   : > { %v2508_v33 = vsel %vm2507_vm7, %v2506_v27, %v2505_v12 }
 0x216   : > { %v2511_v39 = vsel %vm2510_vm8, %v2509_v46, %v2508_v33 }
 0x217   : > { %3759 = vmatmul.mubr.msk.f32.vlgmr.msra.gmra.mrb[86].mxu1 %vm2030_vm0, %v2511_v39 }
 0x218   : > { %3853 = vmatpush3.bf16.msra.mxu1 %v3852_v35  ;;  %3765 = vmatprep.mubr.msk.f32.mxu1 %vm3980_vm1, %v3981_v29 }
 0x219   : > { %3854 = vmatprep.subr.bf16.mxu1 %v3979_v15 }
 0x21b   : > { %3766 = vmatmul.mubr.msk.f32.vlgmr.msra.gmra.mrb[88].mxu1 %vm2597_vm9, %v2587_v37 }
 0x21c   : > { %3856 = vmatpush3.bf16.msra.mxu1 %v3855_v36  ;;  %3774 = vmatprep.mubr.msk.f32.mxu1 %vm3980_vm1, %v3981_v29 }
 0x21d   : > { %3772 = vmatprep.subr.mxu1 %v3981_v29 }
 0x220   : > { %3773 = vmatpush3.msra.mxu1 %v2677_v20 }
 0x221   : > { %3775 = vmatmul.mubr.msk.f32.vlgmr.msra.gmra.mrb[90].mxu1 %vm2685_vm10, %v2674_v10  ;;  %3857 = vmatprep.subr.bf16.mxu1 %v3979_v15 }
 0x222   : > { %3785 = vmatprep.mubr.msk.f32.mxu1 %vm3980_vm1, %v3981_v29  ;;  %3859 = vmatpush3.bf16.msra.mxu1 %v3858_v54 }
 0x223   : > { %3860 = vmatprep.subr.bf16.mxu1 %v3979_v15 }
 0x226   : > { %3862 = vmatpush3.bf16.msra.mxu1 %v3861_v49 }
 0x227   : > { %3863 = vmatprep.subr.bf16.mxu1 %v3979_v15 }
 0x2ea   : > { %v2580_v58 = vpop.f32.mrb[86].mxu1 }
 0x2eb   : > { %v3760_v51 = vpop.f32.mrb[87].mxu1  ;;  %v2581_v4 = vadd.f32 %v3173_v57, %v2580_v58 }
 0x2ed   : > { %v2585_v44 = vmul.f32 0.01, %v2581_v4  ;;  %vm2584_vm13 = vcmp.gt.f32.partialorder %v2581_v4, 0.0 }
 0x2ee   : > { %v2667_v59 = vpop.f32.mrb[88].mxu1 }
 0x2ef   : > { %v2668_v61 = vadd.f32 %v3175_v45, %v2667_v59  ;;  %v3767_v55 = vpop.f32.mrb[89].mxu1  ;;  %v2586_v19 = vsel %vm2584_vm13, %v2581_v4, %v2585_v44 }
 0x2f1   : > { %vm2671_vm11 = vcmp.gt.f32.partialorder %v2668_v61, 0.0  ;;  %v2672_v50 = vmul.f32 0.01, %v2668_v61 }
 0x2f3   : > { %v2673_v30 = vsel %vm2671_vm11, %v2668_v61, %v2672_v50 }
 0x2f4   : > { %3786 = vmatmul.mubr.msk.f32.vlgmr.msra.gmra.mrb[92].mxu1 %vm2770_vm12, %v2673_v30  ;;  %v2755_v41 = vpop.f32.mrb[90].mxu1 }
 0x2f5   : > { %3865 = vmatpush3.bf16.msra.mxu1 %v3864_v62  ;;  %3796 = vmatprep.mubr.msk.f32.mxu1 %vm3980_vm1, %v3981_v29  ;;  %v3776_v6 = vpop.f32.mrb[91].mxu1  ;;  %v2756_v9 = vadd.f32 %v3177_v3, %v2755_v41 }
 0x2f6   : > { %3866 = vmatprep.subr.bf16.mxu1 %v3979_v15 }
 0x2f7   : > { %v2760_v16 = vmul.f32 0.01, %v2756_v9  ;;  %vm2759_vm14 = vcmp.gt.f32.partialorder %v2756_v9, 0.0 }
 0x2f9   : > { %3868 = vmatpush3.bf16.msra.mxu1 %v3867_v63  ;;  %v2761_v5 = vsel %vm2759_vm14, %v2756_v9, %v2760_v16 }
 0x2fa   : > { %3869 = vmatprep.subr.bf16.mxu1 %v3979_v15 }
 0x2fc   : > { %3797 = vmatmul.mubr.msk.f32.vlgmr.msra.gmra.mrb[94].mxu1 %vm2770_vm12, %v2586_v19 }
 0x2fd   : > { %3871 = vmatpush3.bf16.msra.mxu1 %v3870_v7  ;;  %3807 = vmatprep.mubr.msk.f32.mxu1 %vm3980_vm1, %v3981_v29 }
 0x2fe   : > { %3872 = vmatprep.subr.bf16.mxu1 %v3979_v15 }
 0x301   : > { %3874 = vmatpush3.bf16.msra.mxu1 %v3873_v53 }
 0x304   : > { %3808 = vmatmul.mubr.msk.f32.vlgmr.msra.gmra.mrb[96].mxu1 %vm2770_vm12, %v2761_v5 }
 0x3c7   : > { %v2840_v17 = vpop.f32.mrb[92].mxu1 }
 0x3c8   : > { %v3787_v32 = vpop.f32.mrb[93].mxu1 }
 0x3cf   : > { %v2913_v21 = vpop.f32.mrb[94].mxu1 }
 0x3d0   : > { %v2914_v60 = vadd.f32 %v2913_v21, %v2840_v17  ;;  %v3798_v22 = vpop.f32.mrb[95].mxu1 }
 0x3d7   : > { %v2990_v24 = vpop.f32.mrb[96].mxu1 }
 0x3d8   : > { %v2994_v2 = vadd.f32 %v2990_v24, %v2914_v60  ;;  %v3809_v29 = vpop.f32.mrb[97].mxu1 }
 0x3da   : > { %v3002_v14 = vadd.f32 %v3182_v1, %v2994_v2 }
 0x3dc   : > { %3003 = vst.msk [vmem:[#allocation2] sm:$0xff] %vm2597_vm9, %v3002_v14 }
 0x3dd PF: > { %v3006_v15 = vld [vmem:[%s4117_s22 + $0x8] sm:$0xff]  ;;  %v3008_v25 = vld [vmem:[%s4117_s22 + $0x18] sm:$0xff]  ;;  %v3005_v40 = vld [vmem:[%s4117_s22] sm:$0xff]  ;;  %v3982_v27 = vmov 0.0   ;;  %vm3009_vm15 = vcmask 130048  }
 0x3de   : > { %v3875_v26 = vpack.c.bf16 %v3008_v25, %v3006_v15  ;;  %v3007_v42 = vld [vmem:[%s4117_s22 + $0x10] sm:$0xff]  ;;  %3077 = vmatprep.mubr.f32.mxu0 %v3982_v27 }
 0x3df   : > { %v3877_v56 = vpack.c.bf16 %v3007_v42, %v3005_v40 }
 0x3e0   : > { %3876 = vmatprep.subr.bf16.mxu0 %v3875_v26 }
 0x3e1   : > { %3878 = vmatpush1.bf16.msra.mxu0 %v3877_v56 }
 0x3e3   : > { %v3004_v12 = vld [vmem:[#allocation2] sm:$0xff] }
 0x3e4   : > { %3183 = vmatmul.mubr.msk.f32.vlgmr.msra.gmra.mrb[0].mxu0 %vm3009_vm15, %v3004_v12 }
 0x4b7   : > { %v3079_v46 = vpop.f32.mrb[0].mxu0 }
 0x4b8   : > { %v3184_v35 = vmul.f32 -1.442695, %v3079_v46  ;;  %v3081_v33 = vpop.f32.mrb[1].mxu0 }
 0x4b9   : > { %v3185_v23 = vmul.f32 -1.442695, %v3081_v33 }
 0x4ba   : > { %3947 = vpow2.f32 %v3184_v35 }
 0x4bb   : > { %3949 = vpow2.f32 %v3185_v23 }
 0x4c4   : > { %v3948_v28 = vpop.eup %3947 }
 0x4c5   : > { %v3950_v39 = vpop.eup %3949  ;;  %v3090_v37 = vadd.f32 1.0, %v3948_v28 }
 0x4c6   : > { %v3091_v36 = vadd.f32 1.0, %v3950_v39 }
 0x4c7   : > { %3951 = vrcp.f32 %v3090_v37 }
 0x4c8   : > { %3953 = vrcp.f32 %v3091_v36 }
 0x4d1   : > { %v3952_v20 = vpop.eup %3951 }
 0x4d2   : > { %v3954_v10 = vpop.eup %3953  ;;  %3096 = vst [vmem:[%s4115_s21] sm:$0xff] %v3952_v20 }
 0x4d3   : > { %3097 = vst [vmem:[%s4115_s21 + $0x8] sm:$0xff] %v3954_v10 }
 0x4d4 PF: > { %s5565_s26 = sld [smem:[#allocation5_spill]]  ;;  %s5566_s24 = sld [smem:[#allocation4_spill]] }
 0x4d5   : > { %s5567_s25 = sld [smem:[#allocation6_spill]] }
 0x4da   : > { %p24_p10 = scmp.ge.s32.totalorder %s5565_s26, 4  }
 0x4dc   :  { %26 = sbr.rel (!%p24_p10) target bundleno = 6 (0x6), region = 150 }

</bundles_post_ra>
